<compile_context>
chip_gen: v7x
topology: tpu7x:2x2x1
jax: 0.10.0
libtpu: 0.0.40
codegen_flags: <defaults>
</compile_context>

<pallas_src>
import functools
import math

import jax
import jax.numpy as jnp
from jax import lax
from jax.experimental import pallas as pl
from jax.experimental.pallas import tpu as pltpu


# Inter-layer activation dtype. jnp.bfloat16 halves HBM traffic for the layer
# hand-off (MXU-native on all generations); keep f32 for closest PyTorch parity.
INTERLAYER_DTYPE = jnp.float32


def _largest_divisor_leq(n: int, cap: int) -> int:
    for d in range(min(n, cap), 0, -1):
        if n % d == 0:
            return d
    return 1


# ---------------------------------------------------------------------------
# Kernel 1: fused per-direction input projection  gx = x @ W_ih + (b_ih + b_hh)
# ---------------------------------------------------------------------------

def _matmul_bias_kernel(x_ref, w_ref, b_ref, o_ref):
    """x_ref: (RB, D), w_ref: (D, 4H), b_ref: (1, 4H) -> o_ref: (RB, 4H)."""
    o_ref[...] = (
        jnp.dot(x_ref[...], w_ref[...], preferred_element_type=jnp.float32)
        + b_ref[...]
    ).astype(o_ref.dtype)


def input_projection(x_tbd, w_ih, bias):
    """x_tbd: (T,B,D); w_ih: (2,D,4H); bias: (2,1,4H) -> (2,T,B,4H) float32."""
    T, B, D = x_tbd.shape
    G = w_ih.shape[-1]
    TB = T * B
    x2d = x_tbd.reshape(TB, D)                      # free reshape in the wrapper
    rb = TB if TB <= 512 else 256                   # row block (multiple of 8 when tiled)
    nrb = pl.cdiv(TB, rb)

    out = pl.pallas_call(
        _matmul_bias_kernel,
        out_shape=jax.ShapeDtypeStruct((2, TB, G), jnp.float32),
        grid_spec=pltpu.PrefetchScalarGridSpec(
            num_scalar_prefetch=0,
            grid=(2, nrb),
            in_specs=[
                pl.BlockSpec((rb, D), lambda d, r: (r, 0)),
                pl.BlockSpec((None, D, G), lambda d, r: (d, 0, 0)),
                pl.BlockSpec((None, 1, G), lambda d, r: (d, 0, 0)),
            ],
            out_specs=pl.BlockSpec((None, rb, G), lambda d, r: (d, r, 0)),
        ),
        compiler_params=pltpu.CompilerParams(
            dimension_semantics=("parallel", "parallel"),
        ),
    )(x2d, w_ih, bias)
    return out.reshape(2, T, B, G)


# ---------------------------------------------------------------------------
# Kernel 2: fused bidirectional LSTM recurrence (only h @ W_hh on the serial path)
# ---------------------------------------------------------------------------

def _bilstm_recurrence_kernel(gx_ref, whh_ref, y_ref, h_scr, c_scr, *, hidden, tt):
    """Grid = (direction, time_block).

    gx_ref : (TT, B, 4H)  precomputed x@W_ih + bias for this (dir, time block)
    whh_ref: (H, 4H)      hidden->gates weight for this direction
    y_ref  : (TT, B, H)   hidden-state output block
    h_scr  : (2, B, H)    per-direction hidden carry (f32)
    c_scr  : (2, B, H)    per-direction cell carry (f32)

    Gate packing (reordered at init): columns = [i | f | o | g].
    """
    d = pl.program_id(0)    # 0 = forward, 1 = backward
    tb = pl.program_id(1)   # time-block index (sequential / "arbitrary")
    H = hidden

    @pl.when(tb == 0)
    def _():
        zeros = jnp.zeros(h_scr.shape[1:], h_scr.dtype)
        h_scr[d] = zeros
        c_scr[d] = zeros

    whh = whh_ref[...]      # (H, 4H), resident for the whole call

    def step(i, carry):
        h, c = carry
        # forward: walk the block 0..tt-1; backward: tt-1..0
        t_idx = (1 - d) * i + d * (tt - 1 - i)
        gates = gx_ref[t_idx].astype(jnp.float32) + jnp.dot(
            h, whh, preferred_element_type=jnp.float32)      # (B, 4H)
        sig = jax.nn.sigmoid(gates[:, : 3 * H])               # one (B,3H) EUP slab
        i_g = sig[:, 0:H]
        f_g = sig[:, H:2 * H]
        o_g = sig[:, 2 * H:3 * H]
        g_g = jnp.tanh(gates[:, 3 * H:])
        c_new = f_g * c + i_g * g_g
        h_new = o_g * jnp.tanh(c_new)
        y_ref[t_idx] = h_new.astype(y_ref.dtype)
        return (h_new, c_new)

    h_fin, c_fin = lax.fori_loop(0, tt, step, (h_scr[d], c_scr[d]), unroll=True)
    h_scr[d] = h_fin
    c_scr[d] = c_fin


def bilstm_recurrence(gx, w_hh, *, out_dtype=INTERLAYER_DTYPE):
    """gx: (2,T,B,4H) f32; w_hh: (2,H,4H) -> (2,T,B,H) out_dtype."""
    _, T, B, G = gx.shape
    H = w_hh.shape[1]
    tt = _largest_divisor_leq(T, 32)   # timesteps per grid step
    ntb = T // tt

    def idx(d, t):
        # backward direction consumes/produces time blocks in reverse order
        tblk = (1 - d) * t + d * (ntb - 1 - t)
        return (d, tblk, 0, 0)

    kernel = functools.partial(_bilstm_recurrence_kernel, hidden=H, tt=tt)

    return pl.pallas_call(
        kernel,
        out_shape=jax.ShapeDtypeStruct((2, T, B, H), out_dtype),
        grid_spec=pltpu.PrefetchScalarGridSpec(
            num_scalar_prefetch=0,
            grid=(2, ntb),
            in_specs=[
                pl.BlockSpec((None, tt, B, G), idx),
                pl.BlockSpec((None, H, G), lambda d, t: (d, 0, 0)),
            ],
            out_specs=pl.BlockSpec((None, tt, B, H), idx),
            scratch_shapes=[
                pltpu.VMEM((2, B, H), jnp.float32),  # h carry (per direction)
                pltpu.VMEM((2, B, H), jnp.float32),  # c carry (per direction)
            ],
        ),
        compiler_params=pltpu.CompilerParams(
            # direction axis is independent (per-direction carries) -> can be
            # sharded across the two TensorCores on v7x; time is a serial carry.
            dimension_semantics=("parallel", "arbitrary"),
        ),
    )(gx, w_hh)


# ---------------------------------------------------------------------------
# Kernel 3: row-tiled Linear + Softmax with lane-dense (padded-to-128) classes
# ---------------------------------------------------------------------------

def _linear_softmax_kernel(x_ref, w_ref, b_ref, o_ref):
    """x_ref: (RB, D); w_ref: (D, Cp); b_ref: (1, Cp); o_ref: (RB, Cp)."""
    logits = jnp.dot(x_ref[...], w_ref[...],
                     preferred_element_type=jnp.float32) + b_ref[...]
    m = jnp.max(logits, axis=-1, keepdims=True)
    e = jnp.exp(logits - m)                      # padded classes: exp(-1e30-m) == 0
    o_ref[...] = (e / jnp.sum(e, axis=-1, keepdims=True)).astype(o_ref.dtype)


def linear_softmax(x_tbd, w_pad, b_pad, n_classes):
    """x_tbd: (T,B,D) -> (T,B,n_classes) softmax probabilities (float32)."""
    T, B, D = x_tbd.shape
    Cp = w_pad.shape[1]
    TB = T * B
    x2d = x_tbd.reshape(TB, D)                   # reshape in the wrapper (free)
    rb = TB if TB <= 512 else 256
    nrb = pl.cdiv(TB, rb)

    out = pl.pallas_call(
        _linear_softmax_kernel,
        out_shape=jax.ShapeDtypeStruct((TB, Cp), jnp.float32),
        grid_spec=pltpu.PrefetchScalarGridSpec(
            num_scalar_prefetch=0,
            grid=(nrb,),
            in_specs=[
                pl.BlockSpec((rb, D), lambda r: (r, 0)),
                pl.BlockSpec((D, Cp), lambda r: (0, 0)),
                pl.BlockSpec((1, Cp), lambda r: (0, 0)),
            ],
            out_specs=pl.BlockSpec((rb, Cp), lambda r: (r, 0)),
        ),
        compiler_params=pltpu.CompilerParams(
            dimension_semantics=("parallel",),
        ),
    )(x2d, w_pad, b_pad)
    return out.reshape(T, B, Cp)[:, :, :n_classes]


# ---------------------------------------------------------------------------
# Parameter initialization (mirrors nn.LSTM / nn.Linear shapes & init ranges)
# ---------------------------------------------------------------------------

def init_params(key, input_size, hidden_size, n_classes, num_layers=2):
    H = hidden_size
    k = 1.0 / math.sqrt(H)
    # PyTorch packs gates as (i, f, g, o) rows of W; reorder to (i, f, o, g) so
    # the three sigmoid gates form one contiguous slab in the kernel.
    perm = jnp.concatenate([
        jnp.arange(0, 2 * H), jnp.arange(3 * H, 4 * H), jnp.arange(2 * H, 3 * H)])

    layers = []
    for layer in range(num_layers):
        d_in = input_size if layer == 0 else 2 * H
        w_ih_dirs, w_hh_dirs, b_dirs = [], [], []
        for _direction in range(2):  # 0 = forward, 1 = backward
            key, k1, k2, k3, k4 = jax.random.split(key, 5)
            w_ih = jax.random.uniform(k1, (4 * H, d_in), jnp.float32, -k, k)
            w_hh = jax.random.uniform(k2, (4 * H, H), jnp.float32, -k, k)
            b_ih = jax.random.uniform(k3, (4 * H,), jnp.float32, -k, k)
            b_hh = jax.random.uniform(k4, (4 * H,), jnp.float32, -k, k)
            w_ih_dirs.append(w_ih[perm].T)                        # (d_in, 4H)
            w_hh_dirs.append(w_hh[perm].T)                        # (H, 4H)
            b_dirs.append((b_ih + b_hh)[perm].reshape(1, 4 * H))  # (1, 4H)
        layers.append({
            "w_ih": jnp.stack(w_ih_dirs),   # (2, d_in, 4H)
            "w_hh": jnp.stack(w_hh_dirs),   # (2, H, 4H)
            "b":    jnp.stack(b_dirs),      # (2, 1, 4H)
        })

    # Linear head, padded to a lane-dense 128-wide class dimension. Padded
    # classes get zero weights and bias -1e30 -> softmax mass exactly 0.
    k_lin = 1.0 / math.sqrt(2 * H)
    key, k1, k2 = jax.random.split(key, 3)
    w = jax.random.uniform(k1, (n_classes, 2 * H), jnp.float32, -k_lin, k_lin).T
    b = jax.random.uniform(k2, (n_classes,), jnp.float32, -k_lin, k_lin)
    c_pad = max(128, ((n_classes + 127) // 128) * 128)
    w_pad = jnp.zeros((2 * H, c_pad), jnp.float32).at[:, :n_classes].set(w)
    b_pad = jnp.full((1, c_pad), -1e30, jnp.float32).at[0, :n_classes].set(b)

    return {"layers": layers, "lin_w": w_pad, "lin_b": b_pad}


# ---------------------------------------------------------------------------
# Full forward pass (== LSTMDecoder.forward, eval mode)
# ---------------------------------------------------------------------------

@functools.partial(jax.jit, static_argnums=2)
def lstm_decoder_forward(x_bct, params, n_classes):
    """x_bct: (B, n_channels, T) -> (B, T, n_classes)."""
    # (B, C, T) -> (T, B, C): time-major for the recurrent kernel.
    x = jnp.transpose(x_bct, (2, 0, 1)).astype(jnp.float32)
    T, B = x.shape[0], x.shape[1]
    for lp in params["layers"]:
        H = lp["w_hh"].shape[1]
        gx = input_projection(x, lp["w_ih"], lp["b"])       # (2, T, B, 4H) f32
        y = bilstm_recurrence(gx, lp["w_hh"])                # (2, T, B, H)
        # combine directions: (2,T,B,H) -> (T,B,2H)  [fwd | bwd], matches PyTorch
        x = jnp.transpose(y, (1, 2, 0, 3)).reshape(T, B, 2 * H)
    probs = linear_softmax(x, params["lin_w"], params["lin_b"], n_classes)
    return jnp.transpose(probs, (1, 0, 2))                   # (B, T, n_classes)


if __name__ == "__main__":
    batch, n_channels, n_timesteps = 2, 4, 16
    hidden_size, n_classes = 32, 8

    key = jax.random.PRNGKey(0)
    key, k_x, k_p = jax.random.split(key, 3)
    x = jax.random.normal(k_x, (batch, n_channels, n_timesteps), jnp.float32)

    params = init_params(k_p, input_size=n_channels,
                         hidden_size=hidden_size, n_classes=n_classes)

    out = lstm_decoder_forward(x, params, n_classes)
    out = jax.block_until_ready(out)

    assert out.shape == (batch, n_timesteps, n_classes), out.shape
    # softmax rows sum to 1 (padded classes carry exactly zero mass)
    assert jnp.allclose(jnp.sum(out, axis=-1), 1.0, atol=1e-5)
    assert bool(jnp.all(jnp.isfinite(out)))

    print("KERNEL_OK")
</pallas_src>

<mosaic_0001>
module attributes {stable_mosaic.version = 11 : i64} {
  func.func @_bilstm_recurrence_kernel(%arg0: i32, %arg1: i32, %arg2: memref<1x16x2x128xf32, #tpu.memory_space<vmem>>, %arg3: memref<1x32x128xf32, #tpu.memory_space<vmem>>, %arg4: memref<1x16x2x32xf32, #tpu.memory_space<vmem>>, %arg5: memref<2x2x32xf32, #tpu.memory_space<vmem>>, %arg6: memref<2x2x32xf32, #tpu.memory_space<vmem>>) attributes {dimension_semantics = [#tpu.dimension_semantics<parallel>, #tpu.dimension_semantics<arbitrary>], iteration_bounds = array<i64: 2, 1>, scalar_prefetch = 0 : i64, scratch_operands = 2 : i64, tpu.core_type = #tpu.core_type<tc>, window_params = [{transform_indices = @transform_0, window_bounds = array<i64: 1, 16, 2, 128>}, {transform_indices = @transform_1, window_bounds = array<i64: 1, 32, 128>}, {transform_indices = @transform_2, window_bounds = array<i64: 1, 16, 2, 32>}]} {
    %c0_i32 = arith.constant 0 : i32
    %0 = arith.cmpi eq, %arg1, %c0_i32 : i32
    %1 = arith.extui %0 : i1 to i32
    %c0_i32_0 = arith.constant 0 : i32
    %2 = arith.cmpi ne, %1, %c0_i32_0 : i32
    scf.if %2 {
      %cst_171 = arith.constant 0.000000e+00 : f32
      %499 = vector.broadcast %cst_171 : f32 to vector<2x32xf32>
      %500 = arith.index_cast %arg0 : i32 to index
      %c0_172 = arith.constant 0 : index
      %c0_173 = arith.constant 0 : index
      %501 = vector.load %arg5[%500, %c0_172, %c0_173] : memref<2x2x32xf32, #tpu.memory_space<vmem>>, vector<1x2x32xf32>
      %502 = vector.shape_cast %501 : vector<1x2x32xf32> to vector<2x32xf32>
      %503 = vector.shape_cast %499 : vector<2x32xf32> to vector<1x2x32xf32>
      tpu.vector_store %arg5[%500, %c0_172, %c0_173], %503 {strides = array<i32>} : memref<2x2x32xf32, #tpu.memory_space<vmem>>, vector<1x2x32xf32>,
      %504 = arith.index_cast %arg0 : i32 to index
      %c0_174 = arith.constant 0 : index
      %c0_175 = arith.constant 0 : index
      %505 = vector.load %arg6[%504, %c0_174, %c0_175] : memref<2x2x32xf32, #tpu.memory_space<vmem>>, vector<1x2x32xf32>
      %506 = vector.shape_cast %505 : vector<1x2x32xf32> to vector<2x32xf32>
      %507 = vector.shape_cast %499 : vector<2x32xf32> to vector<1x2x32xf32>
      tpu.vector_store %arg6[%504, %c0_174, %c0_175], %507 {strides = array<i32>} : memref<2x2x32xf32, #tpu.memory_space<vmem>>, vector<1x2x32xf32>,
    } else {
    }
    %c0 = arith.constant 0 : index
    %c0_1 = arith.constant 0 : index
    %c0_2 = arith.constant 0 : index
    %3 = vector.load %arg3[%c0, %c0_1, %c0_2] : memref<1x32x128xf32, #tpu.memory_space<vmem>>, vector<1x32x128xf32>
    %4 = vector.shape_cast %3 : vector<1x32x128xf32> to vector<32x128xf32>
    %5 = arith.index_cast %arg0 : i32 to index
    %c0_3 = arith.constant 0 : index
    %c0_4 = arith.constant 0 : index
    %6 = vector.load %arg5[%5, %c0_3, %c0_4] : memref<2x2x32xf32, #tpu.memory_space<vmem>>, vector<1x2x32xf32>
    %7 = vector.shape_cast %6 : vector<1x2x32xf32> to vector<2x32xf32>
    %8 = arith.index_cast %arg0 : i32 to index
    %c0_5 = arith.constant 0 : index
    %c0_6 = arith.constant 0 : index
    %9 = vector.load %arg6[%8, %c0_5, %c0_6] : memref<2x2x32xf32, #tpu.memory_space<vmem>>, vector<1x2x32xf32>
    %10 = vector.shape_cast %9 : vector<1x2x32xf32> to vector<2x32xf32>
    %c0_i32_7 = arith.constant 0 : i32
    %c1_i32 = arith.constant 1 : i32
    %11 = arith.subi %c1_i32, %arg0 : i32
    %12 = arith.muli %11, %c0_i32_7 : i32
    %c15_i32 = arith.constant 15 : i32
    %13 = arith.subi %c15_i32, %c0_i32_7 : i32
    %14 = arith.muli %arg0, %13 : i32
    %15 = arith.addi %12, %14 : i32
    %c0_8 = arith.constant 0 : index
    %16 = arith.index_cast %15 : i32 to index
    %c0_9 = arith.constant 0 : index
    %c0_10 = arith.constant 0 : index
    %17 = vector.load %arg2[%c0_8, %16, %c0_9, %c0_10] : memref<1x16x2x128xf32, #tpu.memory_space<vmem>>, vector<1x1x2x128xf32>
    %18 = vector.shape_cast %17 : vector<1x1x2x128xf32> to vector<2x128xf32>
    %cst = arith.constant dense<0.000000e+00> : vector<2x128xf32>
    %19 = tpu.matmul %7, %4, %cst {dimension_numbers = #tpu.dot_dimension_numbers<[1], [0], [0], [1], [0, 0, 1, 1], [], []>} : vector<2x32xf32>, vector<32x128xf32>, vector<2x128xf32> -> vector<2x128xf32>
    %20 = arith.addf %18, %19 : vector<2x128xf32>
    %21 = vector.extract_strided_slice %20 {offsets = [0, 0], sizes = [2, 96], strides = [1, 1]} : vector<2x128xf32> to vector<2x96xf32>
    %22 = arith.negf %21 : vector<2x96xf32>
    %23 = math.exp %22 : vector<2x96xf32>
    %cst_11 = arith.constant 1.000000e+00 : f32
    %24 = vector.broadcast %cst_11 : f32 to vector<2x96xf32>
    %25 = arith.addf %24, %23 : vector<2x96xf32>
    %26 = arith.divf %24, %25 : vector<2x96xf32>
    %27 = vector.extract_strided_slice %26 {offsets = [0, 0], sizes = [2, 32], strides = [1, 1]} : vector<2x96xf32> to vector<2x32xf32>
    %28 = vector.extract_strided_slice %26 {offsets = [0, 32], sizes = [2, 32], strides = [1, 1]} : vector<2x96xf32> to vector<2x32xf32>
    %29 = vector.extract_strided_slice %26 {offsets = [0, 64], sizes = [2, 32], strides = [1, 1]} : vector<2x96xf32> to vector<2x32xf32>
    %30 = vector.extract_strided_slice %20 {offsets = [0, 96], sizes = [2, 32], strides = [1, 1]} : vector<2x128xf32> to vector<2x32xf32>
    %31 = math.tanh %30 : vector<2x32xf32>
    %32 = arith.mulf %28, %10 : vector<2x32xf32>
    %33 = arith.mulf %27, %31 : vector<2x32xf32>
    %34 = arith.addf %32, %33 : vector<2x32xf32>
    %35 = math.tanh %34 : vector<2x32xf32>
    %36 = arith.mulf %29, %35 : vector<2x32xf32>
    %c0_12 = arith.constant 0 : index
    %37 = arith.index_cast %15 : i32 to index
    %c0_13 = arith.constant 0 : index
    %c0_14 = arith.constant 0 : index
    %38 = vector.load %arg4[%c0_12, %37, %c0_13, %c0_14] : memref<1x16x2x32xf32, #tpu.memory_space<vmem>>, vector<1x1x2x32xf32>
    %39 = vector.shape_cast %38 : vector<1x1x2x32xf32> to vector<2x32xf32>
    %40 = vector.shape_cast %36 : vector<2x32xf32> to vector<1x1x2x32xf32>
    tpu.vector_store %arg4[%c0_12, %37, %c0_13, %c0_14], %40 {strides = array<i32>} : memref<1x16x2x32xf32, #tpu.memory_space<vmem>>, vector<1x1x2x32xf32>,
    %c1_i32_15 = arith.constant 1 : i32
    %c1_i32_16 = arith.constant 1 : i32
    %41 = arith.subi %c1_i32_16, %arg0 : i32
    %42 = arith.muli %41, %c1_i32_15 : i32
    %c15_i32_17 = arith.constant 15 : i32
    %43 = arith.subi %c15_i32_17, %c1_i32_15 : i32
    %44 = arith.muli %arg0, %43 : i32
    %45 = arith.addi %42, %44 : i32
    %c0_18 = arith.constant 0 : index
    %46 = arith.index_cast %45 : i32 to index
    %c0_19 = arith.constant 0 : index
    %c0_20 = arith.constant 0 : index
    %47 = vector.load %arg2[%c0_18, %46, %c0_19, %c0_20] : memref<1x16x2x128xf32, #tpu.memory_space<vmem>>, vector<1x1x2x128xf32>
    %48 = vector.shape_cast %47 : vector<1x1x2x128xf32> to vector<2x128xf32>
    %cst_21 = arith.constant dense<0.000000e+00> : vector<2x128xf32>
    %49 = tpu.matmul %36, %4, %cst_21 {dimension_numbers = #tpu.dot_dimension_numbers<[1], [0], [0], [1], [0, 0, 1, 1], [], []>} : vector<2x32xf32>, vector<32x128xf32>, vector<2x128xf32> -> vector<2x128xf32>
    %50 = arith.addf %48, %49 : vector<2x128xf32>
    %51 = vector.extract_strided_slice %50 {offsets = [0, 0], sizes = [2, 96], strides = [1, 1]} : vector<2x128xf32> to vector<2x96xf32>
    %52 = arith.negf %51 : vector<2x96xf32>
    %53 = math.exp %52 : vector<2x96xf32>
    %cst_22 = arith.constant 1.000000e+00 : f32
    %54 = vector.broadcast %cst_22 : f32 to vector<2x96xf32>
    %55 = arith.addf %54, %53 : vector<2x96xf32>
    %56 = arith.divf %54, %55 : vector<2x96xf32>
    %57 = vector.extract_strided_slice %56 {offsets = [0, 0], sizes = [2, 32], strides = [1, 1]} : vector<2x96xf32> to vector<2x32xf32>
    %58 = vector.extract_strided_slice %56 {offsets = [0, 32], sizes = [2, 32], strides = [1, 1]} : vector<2x96xf32> to vector<2x32xf32>
    %59 = vector.extract_strided_slice %56 {offsets = [0, 64], sizes = [2, 32], strides = [1, 1]} : vector<2x96xf32> to vector<2x32xf32>
    %60 = vector.extract_strided_slice %50 {offsets = [0, 96], sizes = [2, 32], strides = [1, 1]} : vector<2x128xf32> to vector<2x32xf32>
    %61 = math.tanh %60 : vector<2x32xf32>
    %62 = arith.mulf %58, %34 : vector<2x32xf32>
    %63 = arith.mulf %57, %61 : vector<2x32xf32>
    %64 = arith.addf %62, %63 : vector<2x32xf32>
    %65 = math.tanh %64 : vector<2x32xf32>
    %66 = arith.mulf %59, %65 : vector<2x32xf32>
    %c0_23 = arith.constant 0 : index
    %67 = arith.index_cast %45 : i32 to index
    %c0_24 = arith.constant 0 : index
    %c0_25 = arith.constant 0 : index
    %68 = vector.load %arg4[%c0_23, %67, %c0_24, %c0_25] : memref<1x16x2x32xf32, #tpu.memory_space<vmem>>, vector<1x1x2x32xf32>
    %69 = vector.shape_cast %68 : vector<1x1x2x32xf32> to vector<2x32xf32>
    %70 = vector.shape_cast %66 : vector<2x32xf32> to vector<1x1x2x32xf32>
    tpu.vector_store %arg4[%c0_23, %67, %c0_24, %c0_25], %70 {strides = array<i32>} : memref<1x16x2x32xf32, #tpu.memory_space<vmem>>, vector<1x1x2x32xf32>,
    %c2_i32 = arith.constant 2 : i32
    %c1_i32_26 = arith.constant 1 : i32
    %71 = arith.subi %c1_i32_26, %arg0 : i32
    %72 = arith.muli %71, %c2_i32 : i32
    %c15_i32_27 = arith.constant 15 : i32
    %73 = arith.subi %c15_i32_27, %c2_i32 : i32
    %74 = arith.muli %arg0, %73 : i32
    %75 = arith.addi %72, %74 : i32
    %c0_28 = arith.constant 0 : index
    %76 = arith.index_cast %75 : i32 to index
    %c0_29 = arith.constant 0 : index
    %c0_30 = arith.constant 0 : index
    %77 = vector.load %arg2[%c0_28, %76, %c0_29, %c0_30] : memref<1x16x2x128xf32, #tpu.memory_space<vmem>>, vector<1x1x2x128xf32>
    %78 = vector.shape_cast %77 : vector<1x1x2x128xf32> to vector<2x128xf32>
    %cst_31 = arith.constant dense<0.000000e+00> : vector<2x128xf32>
    %79 = tpu.matmul %66, %4, %cst_31 {dimension_numbers = #tpu.dot_dimension_numbers<[1], [0], [0], [1], [0, 0, 1, 1], [], []>} : vector<2x32xf32>, vector<32x128xf32>, vector<2x128xf32> -> vector<2x128xf32>
    %80 = arith.addf %78, %79 : vector<2x128xf32>
    %81 = vector.extract_strided_slice %80 {offsets = [0, 0], sizes = [2, 96], strides = [1, 1]} : vector<2x128xf32> to vector<2x96xf32>
    %82 = arith.negf %81 : vector<2x96xf32>
    %83 = math.exp %82 : vector<2x96xf32>
    %cst_32 = arith.constant 1.000000e+00 : f32
    %84 = vector.broadcast %cst_32 : f32 to vector<2x96xf32>
    %85 = arith.addf %84, %83 : vector<2x96xf32>
    %86 = arith.divf %84, %85 : vector<2x96xf32>
    %87 = vector.extract_strided_slice %86 {offsets = [0, 0], sizes = [2, 32], strides = [1, 1]} : vector<2x96xf32> to vector<2x32xf32>
    %88 = vector.extract_strided_slice %86 {offsets = [0, 32], sizes = [2, 32], strides = [1, 1]} : vector<2x96xf32> to vector<2x32xf32>
    %89 = vector.extract_strided_slice %86 {offsets = [0, 64], sizes = [2, 32], strides = [1, 1]} : vector<2x96xf32> to vector<2x32xf32>
    %90 = vector.extract_strided_slice %80 {offsets = [0, 96], sizes = [2, 32], strides = [1, 1]} : vector<2x128xf32> to vector<2x32xf32>
    %91 = math.tanh %90 : vector<2x32xf32>
    %92 = arith.mulf %88, %64 : vector<2x32xf32>
    %93 = arith.mulf %87, %91 : vector<2x32xf32>
    %94 = arith.addf %92, %93 : vector<2x32xf32>
    %95 = math.tanh %94 : vector<2x32xf32>
    %96 = arith.mulf %89, %95 : vector<2x32xf32>
    %c0_33 = arith.constant 0 : index
    %97 = arith.index_cast %75 : i32 to index
    %c0_34 = arith.constant 0 : index
    %c0_35 = arith.constant 0 : index
    %98 = vector.load %arg4[%c0_33, %97, %c0_34, %c0_35] : memref<1x16x2x32xf32, #tpu.memory_space<vmem>>, vector<1x1x2x32xf32>
    %99 = vector.shape_cast %98 : vector<1x1x2x32xf32> to vector<2x32xf32>
    %100 = vector.shape_cast %96 : vector<2x32xf32> to vector<1x1x2x32xf32>
    tpu.vector_store %arg4[%c0_33, %97, %c0_34, %c0_35], %100 {strides = array<i32>} : memref<1x16x2x32xf32, #tpu.memory_space<vmem>>, vector<1x1x2x32xf32>,
    %c3_i32 = arith.constant 3 : i32
    %c1_i32_36 = arith.constant 1 : i32
    %101 = arith.subi %c1_i32_36, %arg0 : i32
    %102 = arith.muli %101, %c3_i32 : i32
    %c15_i32_37 = arith.constant 15 : i32
    %103 = arith.subi %c15_i32_37, %c3_i32 : i32
    %104 = arith.muli %arg0, %103 : i32
    %105 = arith.addi %102, %104 : i32
    %c0_38 = arith.constant 0 : index
    %106 = arith.index_cast %105 : i32 to index
    %c0_39 = arith.constant 0 : index
    %c0_40 = arith.constant 0 : index
    %107 = vector.load %arg2[%c0_38, %106, %c0_39, %c0_40] : memref<1x16x2x128xf32, #tpu.memory_space<vmem>>, vector<1x1x2x128xf32>
    %108 = vector.shape_cast %107 : vector<1x1x2x128xf32> to vector<2x128xf32>
    %cst_41 = arith.constant dense<0.000000e+00> : vector<2x128xf32>
    %109 = tpu.matmul %96, %4, %cst_41 {dimension_numbers = #tpu.dot_dimension_numbers<[1], [0], [0], [1], [0, 0, 1, 1], [], []>} : vector<2x32xf32>, vector<32x128xf32>, vector<2x128xf32> -> vector<2x128xf32>
    %110 = arith.addf %108, %109 : vector<2x128xf32>
    %111 = vector.extract_strided_slice %110 {offsets = [0, 0], sizes = [2, 96], strides = [1, 1]} : vector<2x128xf32> to vector<2x96xf32>
    %112 = arith.negf %111 : vector<2x96xf32>
    %113 = math.exp %112 : vector<2x96xf32>
    %cst_42 = arith.constant 1.000000e+00 : f32
    %114 = vector.broadcast %cst_42 : f32 to vector<2x96xf32>
    %115 = arith.addf %114, %113 : vector<2x96xf32>
    %116 = arith.divf %114, %115 : vector<2x96xf32>
    %117 = vector.extract_strided_slice %116 {offsets = [0, 0], sizes = [2, 32], strides = [1, 1]} : vector<2x96xf32> to vector<2x32xf32>
    %118 = vector.extract_strided_slice %116 {offsets = [0, 32], sizes = [2, 32], strides = [1, 1]} : vector<2x96xf32> to vector<2x32xf32>
    %119 = vector.extract_strided_slice %116 {offsets = [0, 64], sizes = [2, 32], strides = [1, 1]} : vector<2x96xf32> to vector<2x32xf32>
    %120 = vector.extract_strided_slice %110 {offsets = [0, 96], sizes = [2, 32], strides = [1, 1]} : vector<2x128xf32> to vector<2x32xf32>
    %121 = math.tanh %120 : vector<2x32xf32>
    %122 = arith.mulf %118, %94 : vector<2x32xf32>
    %123 = arith.mulf %117, %121 : vector<2x32xf32>
    %124 = arith.addf %122, %123 : vector<2x32xf32>
    %125 = math.tanh %124 : vector<2x32xf32>
    %126 = arith.mulf %119, %125 : vector<2x32xf32>
    %c0_43 = arith.constant 0 : index
    %127 = arith.index_cast %105 : i32 to index
    %c0_44 = arith.constant 0 : index
    %c0_45 = arith.constant 0 : index
    %128 = vector.load %arg4[%c0_43, %127, %c0_44, %c0_45] : memref<1x16x2x32xf32, #tpu.memory_space<vmem>>, vector<1x1x2x32xf32>
    %129 = vector.shape_cast %128 : vector<1x1x2x32xf32> to vector<2x32xf32>
    %130 = vector.shape_cast %126 : vector<2x32xf32> to vector<1x1x2x32xf32>
    tpu.vector_store %arg4[%c0_43, %127, %c0_44, %c0_45], %130 {strides = array<i32>} : memref<1x16x2x32xf32, #tpu.memory_space<vmem>>, vector<1x1x2x32xf32>,
    %c4_i32 = arith.constant 4 : i32
    %c1_i32_46 = arith.constant 1 : i32
    %131 = arith.subi %c1_i32_46, %arg0 : i32
    %132 = arith.muli %131, %c4_i32 : i32
    %c15_i32_47 = arith.constant 15 : i32
    %133 = arith.subi %c15_i32_47, %c4_i32 : i32
    %134 = arith.muli %arg0, %133 : i32
    %135 = arith.addi %132, %134 : i32
    %c0_48 = arith.constant 0 : index
    %136 = arith.index_cast %135 : i32 to index
    %c0_49 = arith.constant 0 : index
    %c0_50 = arith.constant 0 : index
    %137 = vector.load %arg2[%c0_48, %136, %c0_49, %c0_50] : memref<1x16x2x128xf32, #tpu.memory_space<vmem>>, vector<1x1x2x128xf32>
    %138 = vector.shape_cast %137 : vector<1x1x2x128xf32> to vector<2x128xf32>
    %cst_51 = arith.constant dense<0.000000e+00> : vector<2x128xf32>
    %139 = tpu.matmul %126, %4, %cst_51 {dimension_numbers = #tpu.dot_dimension_numbers<[1], [0], [0], [1], [0, 0, 1, 1], [], []>} : vector<2x32xf32>, vector<32x128xf32>, vector<2x128xf32> -> vector<2x128xf32>
    %140 = arith.addf %138, %139 : vector<2x128xf32>
    %141 = vector.extract_strided_slice %140 {offsets = [0, 0], sizes = [2, 96], strides = [1, 1]} : vector<2x128xf32> to vector<2x96xf32>
    %142 = arith.negf %141 : vector<2x96xf32>
    %143 = math.exp %142 : vector<2x96xf32>
    %cst_52 = arith.constant 1.000000e+00 : f32
    %144 = vector.broadcast %cst_52 : f32 to vector<2x96xf32>
    %145 = arith.addf %144, %143 : vector<2x96xf32>
    %146 = arith.divf %144, %145 : vector<2x96xf32>
    %147 = vector.extract_strided_slice %146 {offsets = [0, 0], sizes = [2, 32], strides = [1, 1]} : vector<2x96xf32> to vector<2x32xf32>
    %148 = vector.extract_strided_slice %146 {offsets = [0, 32], sizes = [2, 32], strides = [1, 1]} : vector<2x96xf32> to vector<2x32xf32>
    %149 = vector.extract_strided_slice %146 {offsets = [0, 64], sizes = [2, 32], strides = [1, 1]} : vector<2x96xf32> to vector<2x32xf32>
    %150 = vector.extract_strided_slice %140 {offsets = [0, 96], sizes = [2, 32], strides = [1, 1]} : vector<2x128xf32> to vector<2x32xf32>
    %151 = math.tanh %150 : vector<2x32xf32>
    %152 = arith.mulf %148, %124 : vector<2x32xf32>
    %153 = arith.mulf %147, %151 : vector<2x32xf32>
    %154 = arith.addf %152, %153 : vector<2x32xf32>
    %155 = math.tanh %154 : vector<2x32xf32>
    %156 = arith.mulf %149, %155 : vector<2x32xf32>
    %c0_53 = arith.constant 0 : index
    %157 = arith.index_cast %135 : i32 to index
    %c0_54 = arith.constant 0 : index
    %c0_55 = arith.constant 0 : index
    %158 = vector.load %arg4[%c0_53, %157, %c0_54, %c0_55] : memref<1x16x2x32xf32, #tpu.memory_space<vmem>>, vector<1x1x2x32xf32>
    %159 = vector.shape_cast %158 : vector<1x1x2x32xf32> to vector<2x32xf32>
    %160 = vector.shape_cast %156 : vector<2x32xf32> to vector<1x1x2x32xf32>
    tpu.vector_store %arg4[%c0_53, %157, %c0_54, %c0_55], %160 {strides = array<i32>} : memref<1x16x2x32xf32, #tpu.memory_space<vmem>>, vector<1x1x2x32xf32>,
    %c5_i32 = arith.constant 5 : i32
    %c1_i32_56 = arith.constant 1 : i32
    %161 = arith.subi %c1_i32_56, %arg0 : i32
    %162 = arith.muli %161, %c5_i32 : i32
    %c15_i32_57 = arith.constant 15 : i32
    %163 = arith.subi %c15_i32_57, %c5_i32 : i32
    %164 = arith.muli %arg0, %163 : i32
    %165 = arith.addi %162, %164 : i32
    %c0_58 = arith.constant 0 : index
    %166 = arith.index_cast %165 : i32 to index
    %c0_59 = arith.constant 0 : index
    %c0_60 = arith.constant 0 : index
    %167 = vector.load %arg2[%c0_58, %166, %c0_59, %c0_60] : memref<1x16x2x128xf32, #tpu.memory_space<vmem>>, vector<1x1x2x128xf32>
    %168 = vector.shape_cast %167 : vector<1x1x2x128xf32> to vector<2x128xf32>
    %cst_61 = arith.constant dense<0.000000e+00> : vector<2x128xf32>
    %169 = tpu.matmul %156, %4, %cst_61 {dimension_numbers = #tpu.dot_dimension_numbers<[1], [0], [0], [1], [0, 0, 1, 1], [], []>} : vector<2x32xf32>, vector<32x128xf32>, vector<2x128xf32> -> vector<2x128xf32>
    %170 = arith.addf %168, %169 : vector<2x128xf32>
    %171 = vector.extract_strided_slice %170 {offsets = [0, 0], sizes = [2, 96], strides = [1, 1]} : vector<2x128xf32> to vector<2x96xf32>
    %172 = arith.negf %171 : vector<2x96xf32>
    %173 = math.exp %172 : vector<2x96xf32>
    %cst_62 = arith.constant 1.000000e+00 : f32
    %174 = vector.broadcast %cst_62 : f32 to vector<2x96xf32>
    %175 = arith.addf %174, %173 : vector<2x96xf32>
    %176 = arith.divf %174, %175 : vector<2x96xf32>
    %177 = vector.extract_strided_slice %176 {offsets = [0, 0], sizes = [2, 32], strides = [1, 1]} : vector<2x96xf32> to vector<2x32xf32>
    %178 = vector.extract_strided_slice %176 {offsets = [0, 32], sizes = [2, 32], strides = [1, 1]} : vector<2x96xf32> to vector<2x32xf32>
    %179 = vector.extract_strided_slice %176 {offsets = [0, 64], sizes = [2, 32], strides = [1, 1]} : vector<2x96xf32> to vector<2x32xf32>
    %180 = vector.extract_strided_slice %170 {offsets = [0, 96], sizes = [2, 32], strides = [1, 1]} : vector<2x128xf32> to vector<2x32xf32>
    %181 = math.tanh %180 : vector<2x32xf32>
    %182 = arith.mulf %178, %154 : vector<2x32xf32>
    %183 = arith.mulf %177, %181 : vector<2x32xf32>
    %184 = arith.addf %182, %183 : vector<2x32xf32>
    %185 = math.tanh %184 : vector<2x32xf32>
    %186 = arith.mulf %179, %185 : vector<2x32xf32>
    %c0_63 = arith.constant 0 : index
    %187 = arith.index_cast %165 : i32 to index
    %c0_64 = arith.constant 0 : index
    %c0_65 = arith.constant 0 : index
    %188 = vector.load %arg4[%c0_63, %187, %c0_64, %c0_65] : memref<1x16x2x32xf32, #tpu.memory_space<vmem>>, vector<1x1x2x32xf32>
    %189 = vector.shape_cast %188 : vector<1x1x2x32xf32> to vector<2x32xf32>
    %190 = vector.shape_cast %186 : vector<2x32xf32> to vector<1x1x2x32xf32>
    tpu.vector_store %arg4[%c0_63, %187, %c0_64, %c0_65], %190 {strides = array<i32>} : memref<1x16x2x32xf32, #tpu.memory_space<vmem>>, vector<1x1x2x32xf32>,
    %c6_i32 = arith.constant 6 : i32
    %c1_i32_66 = arith.constant 1 : i32
    %191 = arith.subi %c1_i32_66, %arg0 : i32
    %192 = arith.muli %191, %c6_i32 : i32
    %c15_i32_67 = arith.constant 15 : i32
    %193 = arith.subi %c15_i32_67, %c6_i32 : i32
    %194 = arith.muli %arg0, %193 : i32
    %195 = arith.addi %192, %194 : i32
    %c0_68 = arith.constant 0 : index
    %196 = arith.index_cast %195 : i32 to index
    %c0_69 = arith.constant 0 : index
    %c0_70 = arith.constant 0 : index
    %197 = vector.load %arg2[%c0_68, %196, %c0_69, %c0_70] : memref<1x16x2x128xf32, #tpu.memory_space<vmem>>, vector<1x1x2x128xf32>
    %198 = vector.shape_cast %197 : vector<1x1x2x128xf32> to vector<2x128xf32>
    %cst_71 = arith.constant dense<0.000000e+00> : vector<2x128xf32>
    %199 = tpu.matmul %186, %4, %cst_71 {dimension_numbers = #tpu.dot_dimension_numbers<[1], [0], [0], [1], [0, 0, 1, 1], [], []>} : vector<2x32xf32>, vector<32x128xf32>, vector<2x128xf32> -> vector<2x128xf32>
    %200 = arith.addf %198, %199 : vector<2x128xf32>
    %201 = vector.extract_strided_slice %200 {offsets = [0, 0], sizes = [2, 96], strides = [1, 1]} : vector<2x128xf32> to vector<2x96xf32>
    %202 = arith.negf %201 : vector<2x96xf32>
    %203 = math.exp %202 : vector<2x96xf32>
    %cst_72 = arith.constant 1.000000e+00 : f32
    %204 = vector.broadcast %cst_72 : f32 to vector<2x96xf32>
    %205 = arith.addf %204, %203 : vector<2x96xf32>
    %206 = arith.divf %204, %205 : vector<2x96xf32>
    %207 = vector.extract_strided_slice %206 {offsets = [0, 0], sizes = [2, 32], strides = [1, 1]} : vector<2x96xf32> to vector<2x32xf32>
    %208 = vector.extract_strided_slice %206 {offsets = [0, 32], sizes = [2, 32], strides = [1, 1]} : vector<2x96xf32> to vector<2x32xf32>
    %209 = vector.extract_strided_slice %206 {offsets = [0, 64], sizes = [2, 32], strides = [1, 1]} : vector<2x96xf32> to vector<2x32xf32>
    %210 = vector.extract_strided_slice %200 {offsets = [0, 96], sizes = [2, 32], strides = [1, 1]} : vector<2x128xf32> to vector<2x32xf32>
    %211 = math.tanh %210 : vector<2x32xf32>
    %212 = arith.mulf %208, %184 : vector<2x32xf32>
    %213 = arith.mulf %207, %211 : vector<2x32xf32>
    %214 = arith.addf %212, %213 : vector<2x32xf32>
    %215 = math.tanh %214 : vector<2x32xf32>
    %216 = arith.mulf %209, %215 : vector<2x32xf32>
    %c0_73 = arith.constant 0 : index
    %217 = arith.index_cast %195 : i32 to index
    %c0_74 = arith.constant 0 : index
    %c0_75 = arith.constant 0 : index
    %218 = vector.load %arg4[%c0_73, %217, %c0_74, %c0_75] : memref<1x16x2x32xf32, #tpu.memory_space<vmem>>, vector<1x1x2x32xf32>
    %219 = vector.shape_cast %218 : vector<1x1x2x32xf32> to vector<2x32xf32>
    %220 = vector.shape_cast %216 : vector<2x32xf32> to vector<1x1x2x32xf32>
    tpu.vector_store %arg4[%c0_73, %217, %c0_74, %c0_75], %220 {strides = array<i32>} : memref<1x16x2x32xf32, #tpu.memory_space<vmem>>, vector<1x1x2x32xf32>,
    %c7_i32 = arith.constant 7 : i32
    %c1_i32_76 = arith.constant 1 : i32
    %221 = arith.subi %c1_i32_76, %arg0 : i32
    %222 = arith.muli %221, %c7_i32 : i32
    %c15_i32_77 = arith.constant 15 : i32
    %223 = arith.subi %c15_i32_77, %c7_i32 : i32
    %224 = arith.muli %arg0, %223 : i32
    %225 = arith.addi %222, %224 : i32
    %c0_78 = arith.constant 0 : index
    %226 = arith.index_cast %225 : i32 to index
    %c0_79 = arith.constant 0 : index
    %c0_80 = arith.constant 0 : index
    %227 = vector.load %arg2[%c0_78, %226, %c0_79, %c0_80] : memref<1x16x2x128xf32, #tpu.memory_space<vmem>>, vector<1x1x2x128xf32>
    %228 = vector.shape_cast %227 : vector<1x1x2x128xf32> to vector<2x128xf32>
    %cst_81 = arith.constant dense<0.000000e+00> : vector<2x128xf32>
    %229 = tpu.matmul %216, %4, %cst_81 {dimension_numbers = #tpu.dot_dimension_numbers<[1], [0], [0], [1], [0, 0, 1, 1], [], []>} : vector<2x32xf32>, vector<32x128xf32>, vector<2x128xf32> -> vector<2x128xf32>
    %230 = arith.addf %228, %229 : vector<2x128xf32>
    %231 = vector.extract_strided_slice %230 {offsets = [0, 0], sizes = [2, 96], strides = [1, 1]} : vector<2x128xf32> to vector<2x96xf32>
    %232 = arith.negf %231 : vector<2x96xf32>
    %233 = math.exp %232 : vector<2x96xf32>
    %cst_82 = arith.constant 1.000000e+00 : f32
    %234 = vector.broadcast %cst_82 : f32 to vector<2x96xf32>
    %235 = arith.addf %234, %233 : vector<2x96xf32>
    %236 = arith.divf %234, %235 : vector<2x96xf32>
    %237 = vector.extract_strided_slice %236 {offsets = [0, 0], sizes = [2, 32], strides = [1, 1]} : vector<2x96xf32> to vector<2x32xf32>
    %238 = vector.extract_strided_slice %236 {offsets = [0, 32], sizes = [2, 32], strides = [1, 1]} : vector<2x96xf32> to vector<2x32xf32>
    %239 = vector.extract_strided_slice %236 {offsets = [0, 64], sizes = [2, 32], strides = [1, 1]} : vector<2x96xf32> to vector<2x32xf32>
    %240 = vector.extract_strided_slice %230 {offsets = [0, 96], sizes = [2, 32], strides = [1, 1]} : vector<2x128xf32> to vector<2x32xf32>
    %241 = math.tanh %240 : vector<2x32xf32>
    %242 = arith.mulf %238, %214 : vector<2x32xf32>
    %243 = arith.mulf %237, %241 : vector<2x32xf32>
    %244 = arith.addf %242, %243 : vector<2x32xf32>
    %245 = math.tanh %244 : vector<2x32xf32>
    %246 = arith.mulf %239, %245 : vector<2x32xf32>
    %c0_83 = arith.constant 0 : index
    %247 = arith.index_cast %225 : i32 to index
    %c0_84 = arith.constant 0 : index
    %c0_85 = arith.constant 0 : index
    %248 = vector.load %arg4[%c0_83, %247, %c0_84, %c0_85] : memref<1x16x2x32xf32, #tpu.memory_space<vmem>>, vector<1x1x2x32xf32>
    %249 = vector.shape_cast %248 : vector<1x1x2x32xf32> to vector<2x32xf32>
    %250 = vector.shape_cast %246 : vector<2x32xf32> to vector<1x1x2x32xf32>
    tpu.vector_store %arg4[%c0_83, %247, %c0_84, %c0_85], %250 {strides = array<i32>} : memref<1x16x2x32xf32, #tpu.memory_space<vmem>>, vector<1x1x2x32xf32>,
    %c8_i32 = arith.constant 8 : i32
    %c1_i32_86 = arith.constant 1 : i32
    %251 = arith.subi %c1_i32_86, %arg0 : i32
    %252 = arith.muli %251, %c8_i32 : i32
    %c15_i32_87 = arith.constant 15 : i32
    %253 = arith.subi %c15_i32_87, %c8_i32 : i32
    %254 = arith.muli %arg0, %253 : i32
    %255 = arith.addi %252, %254 : i32
    %c0_88 = arith.constant 0 : index
    %256 = arith.index_cast %255 : i32 to index
    %c0_89 = arith.constant 0 : index
    %c0_90 = arith.constant 0 : index
    %257 = vector.load %arg2[%c0_88, %256, %c0_89, %c0_90] : memref<1x16x2x128xf32, #tpu.memory_space<vmem>>, vector<1x1x2x128xf32>
    %258 = vector.shape_cast %257 : vector<1x1x2x128xf32> to vector<2x128xf32>
    %cst_91 = arith.constant dense<0.000000e+00> : vector<2x128xf32>
    %259 = tpu.matmul %246, %4, %cst_91 {dimension_numbers = #tpu.dot_dimension_numbers<[1], [0], [0], [1], [0, 0, 1, 1], [], []>} : vector<2x32xf32>, vector<32x128xf32>, vector<2x128xf32> -> vector<2x128xf32>
    %260 = arith.addf %258, %259 : vector<2x128xf32>
    %261 = vector.extract_strided_slice %260 {offsets = [0, 0], sizes = [2, 96], strides = [1, 1]} : vector<2x128xf32> to vector<2x96xf32>
    %262 = arith.negf %261 : vector<2x96xf32>
    %263 = math.exp %262 : vector<2x96xf32>
    %cst_92 = arith.constant 1.000000e+00 : f32
    %264 = vector.broadcast %cst_92 : f32 to vector<2x96xf32>
    %265 = arith.addf %264, %263 : vector<2x96xf32>
    %266 = arith.divf %264, %265 : vector<2x96xf32>
    %267 = vector.extract_strided_slice %266 {offsets = [0, 0], sizes = [2, 32], strides = [1, 1]} : vector<2x96xf32> to vector<2x32xf32>
    %268 = vector.extract_strided_slice %266 {offsets = [0, 32], sizes = [2, 32], strides = [1, 1]} : vector<2x96xf32> to vector<2x32xf32>
    %269 = vector.extract_strided_slice %266 {offsets = [0, 64], sizes = [2, 32], strides = [1, 1]} : vector<2x96xf32> to vector<2x32xf32>
    %270 = vector.extract_strided_slice %260 {offsets = [0, 96], sizes = [2, 32], strides = [1, 1]} : vector<2x128xf32> to vector<2x32xf32>
    %271 = math.tanh %270 : vector<2x32xf32>
    %272 = arith.mulf %268, %244 : vector<2x32xf32>
    %273 = arith.mulf %267, %271 : vector<2x32xf32>
    %274 = arith.addf %272, %273 : vector<2x32xf32>
    %275 = math.tanh %274 : vector<2x32xf32>
    %276 = arith.mulf %269, %275 : vector<2x32xf32>
    %c0_93 = arith.constant 0 : index
    %277 = arith.index_cast %255 : i32 to index
    %c0_94 = arith.constant 0 : index
    %c0_95 = arith.constant 0 : index
    %278 = vector.load %arg4[%c0_93, %277, %c0_94, %c0_95] : memref<1x16x2x32xf32, #tpu.memory_space<vmem>>, vector<1x1x2x32xf32>
    %279 = vector.shape_cast %278 : vector<1x1x2x32xf32> to vector<2x32xf32>
    %280 = vector.shape_cast %276 : vector<2x32xf32> to vector<1x1x2x32xf32>
    tpu.vector_store %arg4[%c0_93, %277, %c0_94, %c0_95], %280 {strides = array<i32>} : memref<1x16x2x32xf32, #tpu.memory_space<vmem>>, vector<1x1x2x32xf32>,
    %c9_i32 = arith.constant 9 : i32
    %c1_i32_96 = arith.constant 1 : i32
    %281 = arith.subi %c1_i32_96, %arg0 : i32
    %282 = arith.muli %281, %c9_i32 : i32
    %c15_i32_97 = arith.constant 15 : i32
    %283 = arith.subi %c15_i32_97, %c9_i32 : i32
    %284 = arith.muli %arg0, %283 : i32
    %285 = arith.addi %282, %284 : i32
    %c0_98 = arith.constant 0 : index
    %286 = arith.index_cast %285 : i32 to index
    %c0_99 = arith.constant 0 : index
    %c0_100 = arith.constant 0 : index
    %287 = vector.load %arg2[%c0_98, %286, %c0_99, %c0_100] : memref<1x16x2x128xf32, #tpu.memory_space<vmem>>, vector<1x1x2x128xf32>
    %288 = vector.shape_cast %287 : vector<1x1x2x128xf32> to vector<2x128xf32>
    %cst_101 = arith.constant dense<0.000000e+00> : vector<2x128xf32>
    %289 = tpu.matmul %276, %4, %cst_101 {dimension_numbers = #tpu.dot_dimension_numbers<[1], [0], [0], [1], [0, 0, 1, 1], [], []>} : vector<2x32xf32>, vector<32x128xf32>, vector<2x128xf32> -> vector<2x128xf32>
    %290 = arith.addf %288, %289 : vector<2x128xf32>
    %291 = vector.extract_strided_slice %290 {offsets = [0, 0], sizes = [2, 96], strides = [1, 1]} : vector<2x128xf32> to vector<2x96xf32>
    %292 = arith.negf %291 : vector<2x96xf32>
    %293 = math.exp %292 : vector<2x96xf32>
    %cst_102 = arith.constant 1.000000e+00 : f32
    %294 = vector.broadcast %cst_102 : f32 to vector<2x96xf32>
    %295 = arith.addf %294, %293 : vector<2x96xf32>
    %296 = arith.divf %294, %295 : vector<2x96xf32>
    %297 = vector.extract_strided_slice %296 {offsets = [0, 0], sizes = [2, 32], strides = [1, 1]} : vector<2x96xf32> to vector<2x32xf32>
    %298 = vector.extract_strided_slice %296 {offsets = [0, 32], sizes = [2, 32], strides = [1, 1]} : vector<2x96xf32> to vector<2x32xf32>
    %299 = vector.extract_strided_slice %296 {offsets = [0, 64], sizes = [2, 32], strides = [1, 1]} : vector<2x96xf32> to vector<2x32xf32>
    %300 = vector.extract_strided_slice %290 {offsets = [0, 96], sizes = [2, 32], strides = [1, 1]} : vector<2x128xf32> to vector<2x32xf32>
    %301 = math.tanh %300 : vector<2x32xf32>
    %302 = arith.mulf %298, %274 : vector<2x32xf32>
    %303 = arith.mulf %297, %301 : vector<2x32xf32>
    %304 = arith.addf %302, %303 : vector<2x32xf32>
    %305 = math.tanh %304 : vector<2x32xf32>
    %306 = arith.mulf %299, %305 : vector<2x32xf32>
    %c0_103 = arith.constant 0 : index
    %307 = arith.index_cast %285 : i32 to index
    %c0_104 = arith.constant 0 : index
    %c0_105 = arith.constant 0 : index
    %308 = vector.load %arg4[%c0_103, %307, %c0_104, %c0_105] : memref<1x16x2x32xf32, #tpu.memory_space<vmem>>, vector<1x1x2x32xf32>
    %309 = vector.shape_cast %308 : vector<1x1x2x32xf32> to vector<2x32xf32>
    %310 = vector.shape_cast %306 : vector<2x32xf32> to vector<1x1x2x32xf32>
    tpu.vector_store %arg4[%c0_103, %307, %c0_104, %c0_105], %310 {strides = array<i32>} : memref<1x16x2x32xf32, #tpu.memory_space<vmem>>, vector<1x1x2x32xf32>,
    %c10_i32 = arith.constant 10 : i32
    %c1_i32_106 = arith.constant 1 : i32
    %311 = arith.subi %c1_i32_106, %arg0 : i32
    %312 = arith.muli %311, %c10_i32 : i32
    %c15_i32_107 = arith.constant 15 : i32
    %313 = arith.subi %c15_i32_107, %c10_i32 : i32
    %314 = arith.muli %arg0, %313 : i32
    %315 = arith.addi %312, %314 : i32
    %c0_108 = arith.constant 0 : index
    %316 = arith.index_cast %315 : i32 to index
    %c0_109 = arith.constant 0 : index
    %c0_110 = arith.constant 0 : index
    %317 = vector.load %arg2[%c0_108, %316, %c0_109, %c0_110] : memref<1x16x2x128xf32, #tpu.memory_space<vmem>>, vector<1x1x2x128xf32>
    %318 = vector.shape_cast %317 : vector<1x1x2x128xf32> to vector<2x128xf32>
    %cst_111 = arith.constant dense<0.000000e+00> : vector<2x128xf32>
    %319 = tpu.matmul %306, %4, %cst_111 {dimension_numbers = #tpu.dot_dimension_numbers<[1], [0], [0], [1], [0, 0, 1, 1], [], []>} : vector<2x32xf32>, vector<32x128xf32>, vector<2x128xf32> -> vector<2x128xf32>
    %320 = arith.addf %318, %319 : vector<2x128xf32>
    %321 = vector.extract_strided_slice %320 {offsets = [0, 0], sizes = [2, 96], strides = [1, 1]} : vector<2x128xf32> to vector<2x96xf32>
    %322 = arith.negf %321 : vector<2x96xf32>
    %323 = math.exp %322 : vector<2x96xf32>
    %cst_112 = arith.constant 1.000000e+00 : f32
    %324 = vector.broadcast %cst_112 : f32 to vector<2x96xf32>
    %325 = arith.addf %324, %323 : vector<2x96xf32>
    %326 = arith.divf %324, %325 : vector<2x96xf32>
    %327 = vector.extract_strided_slice %326 {offsets = [0, 0], sizes = [2, 32], strides = [1, 1]} : vector<2x96xf32> to vector<2x32xf32>
    %328 = vector.extract_strided_slice %326 {offsets = [0, 32], sizes = [2, 32], strides = [1, 1]} : vector<2x96xf32> to vector<2x32xf32>
    %329 = vector.extract_strided_slice %326 {offsets = [0, 64], sizes = [2, 32], strides = [1, 1]} : vector<2x96xf32> to vector<2x32xf32>
    %330 = vector.extract_strided_slice %320 {offsets = [0, 96], sizes = [2, 32], strides = [1, 1]} : vector<2x128xf32> to vector<2x32xf32>
    %331 = math.tanh %330 : vector<2x32xf32>
    %332 = arith.mulf %328, %304 : vector<2x32xf32>
    %333 = arith.mulf %327, %331 : vector<2x32xf32>
    %334 = arith.addf %332, %333 : vector<2x32xf32>
    %335 = math.tanh %334 : vector<2x32xf32>
    %336 = arith.mulf %329, %335 : vector<2x32xf32>
    %c0_113 = arith.constant 0 : index
    %337 = arith.index_cast %315 : i32 to index
    %c0_114 = arith.constant 0 : index
    %c0_115 = arith.constant 0 : index
    %338 = vector.load %arg4[%c0_113, %337, %c0_114, %c0_115] : memref<1x16x2x32xf32, #tpu.memory_space<vmem>>, vector<1x1x2x32xf32>
    %339 = vector.shape_cast %338 : vector<1x1x2x32xf32> to vector<2x32xf32>
    %340 = vector.shape_cast %336 : vector<2x32xf32> to vector<1x1x2x32xf32>
    tpu.vector_store %arg4[%c0_113, %337, %c0_114, %c0_115], %340 {strides = array<i32>} : memref<1x16x2x32xf32, #tpu.memory_space<vmem>>, vector<1x1x2x32xf32>,
    %c11_i32 = arith.constant 11 : i32
    %c1_i32_116 = arith.constant 1 : i32
    %341 = arith.subi %c1_i32_116, %arg0 : i32
    %342 = arith.muli %341, %c11_i32 : i32
    %c15_i32_117 = arith.constant 15 : i32
    %343 = arith.subi %c15_i32_117, %c11_i32 : i32
    %344 = arith.muli %arg0, %343 : i32
    %345 = arith.addi %342, %344 : i32
    %c0_118 = arith.constant 0 : index
    %346 = arith.index_cast %345 : i32 to index
    %c0_119 = arith.constant 0 : index
    %c0_120 = arith.constant 0 : index
    %347 = vector.load %arg2[%c0_118, %346, %c0_119, %c0_120] : memref<1x16x2x128xf32, #tpu.memory_space<vmem>>, vector<1x1x2x128xf32>
    %348 = vector.shape_cast %347 : vector<1x1x2x128xf32> to vector<2x128xf32>
    %cst_121 = arith.constant dense<0.000000e+00> : vector<2x128xf32>
    %349 = tpu.matmul %336, %4, %cst_121 {dimension_numbers = #tpu.dot_dimension_numbers<[1], [0], [0], [1], [0, 0, 1, 1], [], []>} : vector<2x32xf32>, vector<32x128xf32>, vector<2x128xf32> -> vector<2x128xf32>
    %350 = arith.addf %348, %349 : vector<2x128xf32>
    %351 = vector.extract_strided_slice %350 {offsets = [0, 0], sizes = [2, 96], strides = [1, 1]} : vector<2x128xf32> to vector<2x96xf32>
    %352 = arith.negf %351 : vector<2x96xf32>
    %353 = math.exp %352 : vector<2x96xf32>
    %cst_122 = arith.constant 1.000000e+00 : f32
    %354 = vector.broadcast %cst_122 : f32 to vector<2x96xf32>
    %355 = arith.addf %354, %353 : vector<2x96xf32>
    %356 = arith.divf %354, %355 : vector<2x96xf32>
    %357 = vector.extract_strided_slice %356 {offsets = [0, 0], sizes = [2, 32], strides = [1, 1]} : vector<2x96xf32> to vector<2x32xf32>
    %358 = vector.extract_strided_slice %356 {offsets = [0, 32], sizes = [2, 32], strides = [1, 1]} : vector<2x96xf32> to vector<2x32xf32>
    %359 = vector.extract_strided_slice %356 {offsets = [0, 64], sizes = [2, 32], strides = [1, 1]} : vector<2x96xf32> to vector<2x32xf32>
    %360 = vector.extract_strided_slice %350 {offsets = [0, 96], sizes = [2, 32], strides = [1, 1]} : vector<2x128xf32> to vector<2x32xf32>
    %361 = math.tanh %360 : vector<2x32xf32>
    %362 = arith.mulf %358, %334 : vector<2x32xf32>
    %363 = arith.mulf %357, %361 : vector<2x32xf32>
    %364 = arith.addf %362, %363 : vector<2x32xf32>
    %365 = math.tanh %364 : vector<2x32xf32>
    %366 = arith.mulf %359, %365 : vector<2x32xf32>
    %c0_123 = arith.constant 0 : index
    %367 = arith.index_cast %345 : i32 to index
    %c0_124 = arith.constant 0 : index
    %c0_125 = arith.constant 0 : index
    %368 = vector.load %arg4[%c0_123, %367, %c0_124, %c0_125] : memref<1x16x2x32xf32, #tpu.memory_space<vmem>>, vector<1x1x2x32xf32>
    %369 = vector.shape_cast %368 : vector<1x1x2x32xf32> to vector<2x32xf32>
    %370 = vector.shape_cast %366 : vector<2x32xf32> to vector<1x1x2x32xf32>
    tpu.vector_store %arg4[%c0_123, %367, %c0_124, %c0_125], %370 {strides = array<i32>} : memref<1x16x2x32xf32, #tpu.memory_space<vmem>>, vector<1x1x2x32xf32>,
    %c12_i32 = arith.constant 12 : i32
    %c1_i32_126 = arith.constant 1 : i32
    %371 = arith.subi %c1_i32_126, %arg0 : i32
    %372 = arith.muli %371, %c12_i32 : i32
    %c15_i32_127 = arith.constant 15 : i32
    %373 = arith.subi %c15_i32_127, %c12_i32 : i32
    %374 = arith.muli %arg0, %373 : i32
    %375 = arith.addi %372, %374 : i32
    %c0_128 = arith.constant 0 : index
    %376 = arith.index_cast %375 : i32 to index
    %c0_129 = arith.constant 0 : index
    %c0_130 = arith.constant 0 : index
    %377 = vector.load %arg2[%c0_128, %376, %c0_129, %c0_130] : memref<1x16x2x128xf32, #tpu.memory_space<vmem>>, vector<1x1x2x128xf32>
    %378 = vector.shape_cast %377 : vector<1x1x2x128xf32> to vector<2x128xf32>
    %cst_131 = arith.constant dense<0.000000e+00> : vector<2x128xf32>
    %379 = tpu.matmul %366, %4, %cst_131 {dimension_numbers = #tpu.dot_dimension_numbers<[1], [0], [0], [1], [0, 0, 1, 1], [], []>} : vector<2x32xf32>, vector<32x128xf32>, vector<2x128xf32> -> vector<2x128xf32>
    %380 = arith.addf %378, %379 : vector<2x128xf32>
    %381 = vector.extract_strided_slice %380 {offsets = [0, 0], sizes = [2, 96], strides = [1, 1]} : vector<2x128xf32> to vector<2x96xf32>
    %382 = arith.negf %381 : vector<2x96xf32>
    %383 = math.exp %382 : vector<2x96xf32>
    %cst_132 = arith.constant 1.000000e+00 : f32
    %384 = vector.broadcast %cst_132 : f32 to vector<2x96xf32>
    %385 = arith.addf %384, %383 : vector<2x96xf32>
    %386 = arith.divf %384, %385 : vector<2x96xf32>
    %387 = vector.extract_strided_slice %386 {offsets = [0, 0], sizes = [2, 32], strides = [1, 1]} : vector<2x96xf32> to vector<2x32xf32>
    %388 = vector.extract_strided_slice %386 {offsets = [0, 32], sizes = [2, 32], strides = [1, 1]} : vector<2x96xf32> to vector<2x32xf32>
    %389 = vector.extract_strided_slice %386 {offsets = [0, 64], sizes = [2, 32], strides = [1, 1]} : vector<2x96xf32> to vector<2x32xf32>
    %390 = vector.extract_strided_slice %380 {offsets = [0, 96], sizes = [2, 32], strides = [1, 1]} : vector<2x128xf32> to vector<2x32xf32>
    %391 = math.tanh %390 : vector<2x32xf32>
    %392 = arith.mulf %388, %364 : vector<2x32xf32>
    %393 = arith.mulf %387, %391 : vector<2x32xf32>
    %394 = arith.addf %392, %393 : vector<2x32xf32>
    %395 = math.tanh %394 : vector<2x32xf32>
    %396 = arith.mulf %389, %395 : vector<2x32xf32>
    %c0_133 = arith.constant 0 : index
    %397 = arith.index_cast %375 : i32 to index
    %c0_134 = arith.constant 0 : index
    %c0_135 = arith.constant 0 : index
    %398 = vector.load %arg4[%c0_133, %397, %c0_134, %c0_135] : memref<1x16x2x32xf32, #tpu.memory_space<vmem>>, vector<1x1x2x32xf32>
    %399 = vector.shape_cast %398 : vector<1x1x2x32xf32> to vector<2x32xf32>
    %400 = vector.shape_cast %396 : vector<2x32xf32> to vector<1x1x2x32xf32>
    tpu.vector_store %arg4[%c0_133, %397, %c0_134, %c0_135], %400 {strides = array<i32>} : memref<1x16x2x32xf32, #tpu.memory_space<vmem>>, vector<1x1x2x32xf32>,
    %c13_i32 = arith.constant 13 : i32
    %c1_i32_136 = arith.constant 1 : i32
    %401 = arith.subi %c1_i32_136, %arg0 : i32
    %402 = arith.muli %401, %c13_i32 : i32
    %c15_i32_137 = arith.constant 15 : i32
    %403 = arith.subi %c15_i32_137, %c13_i32 : i32
    %404 = arith.muli %arg0, %403 : i32
    %405 = arith.addi %402, %404 : i32
    %c0_138 = arith.constant 0 : index
    %406 = arith.index_cast %405 : i32 to index
    %c0_139 = arith.constant 0 : index
    %c0_140 = arith.constant 0 : index
    %407 = vector.load %arg2[%c0_138, %406, %c0_139, %c0_140] : memref<1x16x2x128xf32, #tpu.memory_space<vmem>>, vector<1x1x2x128xf32>
    %408 = vector.shape_cast %407 : vector<1x1x2x128xf32> to vector<2x128xf32>
    %cst_141 = arith.constant dense<0.000000e+00> : vector<2x128xf32>
    %409 = tpu.matmul %396, %4, %cst_141 {dimension_numbers = #tpu.dot_dimension_numbers<[1], [0], [0], [1], [0, 0, 1, 1], [], []>} : vector<2x32xf32>, vector<32x128xf32>, vector<2x128xf32> -> vector<2x128xf32>
    %410 = arith.addf %408, %409 : vector<2x128xf32>
    %411 = vector.extract_strided_slice %410 {offsets = [0, 0], sizes = [2, 96], strides = [1, 1]} : vector<2x128xf32> to vector<2x96xf32>
    %412 = arith.negf %411 : vector<2x96xf32>
    %413 = math.exp %412 : vector<2x96xf32>
    %cst_142 = arith.constant 1.000000e+00 : f32
    %414 = vector.broadcast %cst_142 : f32 to vector<2x96xf32>
    %415 = arith.addf %414, %413 : vector<2x96xf32>
    %416 = arith.divf %414, %415 : vector<2x96xf32>
    %417 = vector.extract_strided_slice %416 {offsets = [0, 0], sizes = [2, 32], strides = [1, 1]} : vector<2x96xf32> to vector<2x32xf32>
    %418 = vector.extract_strided_slice %416 {offsets = [0, 32], sizes = [2, 32], strides = [1, 1]} : vector<2x96xf32> to vector<2x32xf32>
    %419 = vector.extract_strided_slice %416 {offsets = [0, 64], sizes = [2, 32], strides = [1, 1]} : vector<2x96xf32> to vector<2x32xf32>
    %420 = vector.extract_strided_slice %410 {offsets = [0, 96], sizes = [2, 32], strides = [1, 1]} : vector<2x128xf32> to vector<2x32xf32>
    %421 = math.tanh %420 : vector<2x32xf32>
    %422 = arith.mulf %418, %394 : vector<2x32xf32>
    %423 = arith.mulf %417, %421 : vector<2x32xf32>
    %424 = arith.addf %422, %423 : vector<2x32xf32>
    %425 = math.tanh %424 : vector<2x32xf32>
    %426 = arith.mulf %419, %425 : vector<2x32xf32>
    %c0_143 = arith.constant 0 : index
    %427 = arith.index_cast %405 : i32 to index
    %c0_144 = arith.constant 0 : index
    %c0_145 = arith.constant 0 : index
    %428 = vector.load %arg4[%c0_143, %427, %c0_144, %c0_145] : memref<1x16x2x32xf32, #tpu.memory_space<vmem>>, vector<1x1x2x32xf32>
    %429 = vector.shape_cast %428 : vector<1x1x2x32xf32> to vector<2x32xf32>
    %430 = vector.shape_cast %426 : vector<2x32xf32> to vector<1x1x2x32xf32>
    tpu.vector_store %arg4[%c0_143, %427, %c0_144, %c0_145], %430 {strides = array<i32>} : memref<1x16x2x32xf32, #tpu.memory_space<vmem>>, vector<1x1x2x32xf32>,
    %c14_i32 = arith.constant 14 : i32
    %c1_i32_146 = arith.constant 1 : i32
    %431 = arith.subi %c1_i32_146, %arg0 : i32
    %432 = arith.muli %431, %c14_i32 : i32
    %c15_i32_147 = arith.constant 15 : i32
    %433 = arith.subi %c15_i32_147, %c14_i32 : i32
    %434 = arith.muli %arg0, %433 : i32
    %435 = arith.addi %432, %434 : i32
    %c0_148 = arith.constant 0 : index
    %436 = arith.index_cast %435 : i32 to index
    %c0_149 = arith.constant 0 : index
    %c0_150 = arith.constant 0 : index
    %437 = vector.load %arg2[%c0_148, %436, %c0_149, %c0_150] : memref<1x16x2x128xf32, #tpu.memory_space<vmem>>, vector<1x1x2x128xf32>
    %438 = vector.shape_cast %437 : vector<1x1x2x128xf32> to vector<2x128xf32>
    %cst_151 = arith.constant dense<0.000000e+00> : vector<2x128xf32>
    %439 = tpu.matmul %426, %4, %cst_151 {dimension_numbers = #tpu.dot_dimension_numbers<[1], [0], [0], [1], [0, 0, 1, 1], [], []>} : vector<2x32xf32>, vector<32x128xf32>, vector<2x128xf32> -> vector<2x128xf32>
    %440 = arith.addf %438, %439 : vector<2x128xf32>
    %441 = vector.extract_strided_slice %440 {offsets = [0, 0], sizes = [2, 96], strides = [1, 1]} : vector<2x128xf32> to vector<2x96xf32>
    %442 = arith.negf %441 : vector<2x96xf32>
    %443 = math.exp %442 : vector<2x96xf32>
    %cst_152 = arith.constant 1.000000e+00 : f32
    %444 = vector.broadcast %cst_152 : f32 to vector<2x96xf32>
    %445 = arith.addf %444, %443 : vector<2x96xf32>
    %446 = arith.divf %444, %445 : vector<2x96xf32>
    %447 = vector.extract_strided_slice %446 {offsets = [0, 0], sizes = [2, 32], strides = [1, 1]} : vector<2x96xf32> to vector<2x32xf32>
    %448 = vector.extract_strided_slice %446 {offsets = [0, 32], sizes = [2, 32], strides = [1, 1]} : vector<2x96xf32> to vector<2x32xf32>
    %449 = vector.extract_strided_slice %446 {offsets = [0, 64], sizes = [2, 32], strides = [1, 1]} : vector<2x96xf32> to vector<2x32xf32>
    %450 = vector.extract_strided_slice %440 {offsets = [0, 96], sizes = [2, 32], strides = [1, 1]} : vector<2x128xf32> to vector<2x32xf32>
    %451 = math.tanh %450 : vector<2x32xf32>
    %452 = arith.mulf %448, %424 : vector<2x32xf32>
    %453 = arith.mulf %447, %451 : vector<2x32xf32>
    %454 = arith.addf %452, %453 : vector<2x32xf32>
    %455 = math.tanh %454 : vector<2x32xf32>
    %456 = arith.mulf %449, %455 : vector<2x32xf32>
    %c0_153 = arith.constant 0 : index
    %457 = arith.index_cast %435 : i32 to index
    %c0_154 = arith.constant 0 : index
    %c0_155 = arith.constant 0 : index
    %458 = vector.load %arg4[%c0_153, %457, %c0_154, %c0_155] : memref<1x16x2x32xf32, #tpu.memory_space<vmem>>, vector<1x1x2x32xf32>
    %459 = vector.shape_cast %458 : vector<1x1x2x32xf32> to vector<2x32xf32>
    %460 = vector.shape_cast %456 : vector<2x32xf32> to vector<1x1x2x32xf32>
    tpu.vector_store %arg4[%c0_153, %457, %c0_154, %c0_155], %460 {strides = array<i32>} : memref<1x16x2x32xf32, #tpu.memory_space<vmem>>, vector<1x1x2x32xf32>,
    %c15_i32_156 = arith.constant 15 : i32
    %c1_i32_157 = arith.constant 1 : i32
    %461 = arith.subi %c1_i32_157, %arg0 : i32
    %462 = arith.muli %461, %c15_i32_156 : i32
    %c15_i32_158 = arith.constant 15 : i32
    %463 = arith.subi %c15_i32_158, %c15_i32_156 : i32
    %464 = arith.muli %arg0, %463 : i32
    %465 = arith.addi %462, %464 : i32
    %c0_159 = arith.constant 0 : index
    %466 = arith.index_cast %465 : i32 to index
    %c0_160 = arith.constant 0 : index
    %c0_161 = arith.constant 0 : index
    %467 = vector.load %arg2[%c0_159, %466, %c0_160, %c0_161] : memref<1x16x2x128xf32, #tpu.memory_space<vmem>>, vector<1x1x2x128xf32>
    %468 = vector.shape_cast %467 : vector<1x1x2x128xf32> to vector<2x128xf32>
    %cst_162 = arith.constant dense<0.000000e+00> : vector<2x128xf32>
    %469 = tpu.matmul %456, %4, %cst_162 {dimension_numbers = #tpu.dot_dimension_numbers<[1], [0], [0], [1], [0, 0, 1, 1], [], []>} : vector<2x32xf32>, vector<32x128xf32>, vector<2x128xf32> -> vector<2x128xf32>
    %470 = arith.addf %468, %469 : vector<2x128xf32>
    %471 = vector.extract_strided_slice %470 {offsets = [0, 0], sizes = [2, 96], strides = [1, 1]} : vector<2x128xf32> to vector<2x96xf32>
    %472 = arith.negf %471 : vector<2x96xf32>
    %473 = math.exp %472 : vector<2x96xf32>
    %cst_163 = arith.constant 1.000000e+00 : f32
    %474 = vector.broadcast %cst_163 : f32 to vector<2x96xf32>
    %475 = arith.addf %474, %473 : vector<2x96xf32>
    %476 = arith.divf %474, %475 : vector<2x96xf32>
    %477 = vector.extract_strided_slice %476 {offsets = [0, 0], sizes = [2, 32], strides = [1, 1]} : vector<2x96xf32> to vector<2x32xf32>
    %478 = vector.extract_strided_slice %476 {offsets = [0, 32], sizes = [2, 32], strides = [1, 1]} : vector<2x96xf32> to vector<2x32xf32>
    %479 = vector.extract_strided_slice %476 {offsets = [0, 64], sizes = [2, 32], strides = [1, 1]} : vector<2x96xf32> to vector<2x32xf32>
    %480 = vector.extract_strided_slice %470 {offsets = [0, 96], sizes = [2, 32], strides = [1, 1]} : vector<2x128xf32> to vector<2x32xf32>
    %481 = math.tanh %480 : vector<2x32xf32>
    %482 = arith.mulf %478, %454 : vector<2x32xf32>
    %483 = arith.mulf %477, %481 : vector<2x32xf32>
    %484 = arith.addf %482, %483 : vector<2x32xf32>
    %485 = math.tanh %484 : vector<2x32xf32>
    %486 = arith.mulf %479, %485 : vector<2x32xf32>
    %c0_164 = arith.constant 0 : index
    %487 = arith.index_cast %465 : i32 to index
    %c0_165 = arith.constant 0 : index
    %c0_166 = arith.constant 0 : index
    %488 = vector.load %arg4[%c0_164, %487, %c0_165, %c0_166] : memref<1x16x2x32xf32, #tpu.memory_space<vmem>>, vector<1x1x2x32xf32>
    %489 = vector.shape_cast %488 : vector<1x1x2x32xf32> to vector<2x32xf32>
    %490 = vector.shape_cast %486 : vector<2x32xf32> to vector<1x1x2x32xf32>
    tpu.vector_store %arg4[%c0_164, %487, %c0_165, %c0_166], %490 {strides = array<i32>} : memref<1x16x2x32xf32, #tpu.memory_space<vmem>>, vector<1x1x2x32xf32>,
    %c16_i32 = arith.constant 16 : i32
    %491 = arith.index_cast %arg0 : i32 to index
    %c0_167 = arith.constant 0 : index
    %c0_168 = arith.constant 0 : index
    %492 = vector.load %arg5[%491, %c0_167, %c0_168] : memref<2x2x32xf32, #tpu.memory_space<vmem>>, vector<1x2x32xf32>
    %493 = vector.shape_cast %492 : vector<1x2x32xf32> to vector<2x32xf32>
    %494 = vector.shape_cast %486 : vector<2x32xf32> to vector<1x2x32xf32>
    tpu.vector_store %arg5[%491, %c0_167, %c0_168], %494 {strides = array<i32>} : memref<2x2x32xf32, #tpu.memory_space<vmem>>, vector<1x2x32xf32>,
    %495 = arith.index_cast %arg0 : i32 to index
    %c0_169 = arith.constant 0 : index
    %c0_170 = arith.constant 0 : index
    %496 = vector.load %arg6[%495, %c0_169, %c0_170] : memref<2x2x32xf32, #tpu.memory_space<vmem>>, vector<1x2x32xf32>
    %497 = vector.shape_cast %496 : vector<1x2x32xf32> to vector<2x32xf32>
    %498 = vector.shape_cast %484 : vector<2x32xf32> to vector<1x2x32xf32>
    tpu.vector_store %arg6[%495, %c0_169, %c0_170], %498 {strides = array<i32>} : memref<2x2x32xf32, #tpu.memory_space<vmem>>, vector<1x2x32xf32>,
    return
  }
  func.func @transform_0(%arg0: i32, %arg1: i32) -> (i32, i32, i32, i32) {
    %c1_i32 = arith.constant 1 : i32
    %0 = arith.subi %c1_i32, %arg0 : i32
    %1 = arith.muli %0, %arg1 : i32
    %c0_i32 = arith.constant 0 : i32
    %2 = arith.subi %c0_i32, %arg1 : i32
    %3 = arith.muli %arg0, %2 : i32
    %4 = arith.addi %1, %3 : i32
    %c0_i32_0 = arith.constant 0 : i32
    %c0_i32_1 = arith.constant 0 : i32
    %c0_i32_2 = arith.constant 0 : i32
    return %arg0, %4, %c0_i32_0, %c0_i32_1 : i32, i32, i32, i32
  }
  func.func @transform_1(%arg0: i32, %arg1: i32) -> (i32, i32, i32) {
    %c0_i32 = arith.constant 0 : i32
    %c0_i32_0 = arith.constant 0 : i32
    %c0_i32_1 = arith.constant 0 : i32
    return %arg0, %c0_i32, %c0_i32_0 : i32, i32, i32
  }
  func.func @transform_2(%arg0: i32, %arg1: i32) -> (i32, i32, i32, i32) {
    %c1_i32 = arith.constant 1 : i32
    %0 = arith.subi %c1_i32, %arg0 : i32
    %1 = arith.muli %0, %arg1 : i32
    %c0_i32 = arith.constant 0 : i32
    %2 = arith.subi %c0_i32, %arg1 : i32
    %3 = arith.muli %arg0, %2 : i32
    %4 = arith.addi %1, %3 : i32
    %c0_i32_0 = arith.constant 0 : i32
    %c0_i32_1 = arith.constant 0 : i32
    %c0_i32_2 = arith.constant 0 : i32
    return %arg0, %4, %c0_i32_0, %c0_i32_1 : i32, i32, i32, i32
  }
}

module attributes {stable_mosaic.version = 11 : i64} {
  func.func @_matmul_bias_kernel(%arg0: i32, %arg1: i32, %arg2: memref<32x4xf32, #tpu.memory_space<vmem>>, %arg3: memref<1x4x128xf32, #tpu.memory_space<vmem>>, %arg4: memref<1x1x128xf32, #tpu.memory_space<vmem>>, %arg5: memref<1x32x128xf32, #tpu.memory_space<vmem>>) attributes {dimension_semantics = [#tpu.dimension_semantics<parallel>, #tpu.dimension_semantics<parallel>], iteration_bounds = array<i64: 2, 1>, scalar_prefetch = 0 : i64, scratch_operands = 0 : i64, tpu.core_type = #tpu.core_type<tc>, window_params = [{transform_indices = @transform_0, window_bounds = array<i64: 32, 4>}, {transform_indices = @transform_1, window_bounds = array<i64: 1, 4, 128>}, {transform_indices = @transform_2, window_bounds = array<i64: 1, 1, 128>}, {transform_indices = @transform_3, window_bounds = array<i64: 1, 32, 128>}]} {
    %c0 = arith.constant 0 : index
    %c0_0 = arith.constant 0 : index
    %0 = vector.load %arg2[%c0, %c0_0] : memref<32x4xf32, #tpu.memory_space<vmem>>, vector<32x4xf32>
    %c0_1 = arith.constant 0 : index
    %c0_2 = arith.constant 0 : index
    %c0_3 = arith.constant 0 : index
    %1 = vector.load %arg3[%c0_1, %c0_2, %c0_3] : memref<1x4x128xf32, #tpu.memory_space<vmem>>, vector<1x4x128xf32>
    %2 = vector.shape_cast %1 : vector<1x4x128xf32> to vector<4x128xf32>
    %cst = arith.constant dense<0.000000e+00> : vector<32x128xf32>
    %3 = tpu.matmul %0, %2, %cst {dimension_numbers = #tpu.dot_dimension_numbers<[1], [0], [0], [1], [0, 0, 1, 1], [], []>} : vector<32x4xf32>, vector<4x128xf32>, vector<32x128xf32> -> vector<32x128xf32>
    %c0_4 = arith.constant 0 : index
    %c0_5 = arith.constant 0 : index
    %c0_6 = arith.constant 0 : index
    %4 = vector.load %arg4[%c0_4, %c0_5, %c0_6] : memref<1x1x128xf32, #tpu.memory_space<vmem>>, vector<1x1x128xf32>
    %5 = vector.shape_cast %4 : vector<1x1x128xf32> to vector<1x128xf32>
    %6 = vector.broadcast %5 : vector<1x128xf32> to vector<32x128xf32>
    %7 = arith.addf %3, %6 : vector<32x128xf32>
    %c0_7 = arith.constant 0 : index
    %c0_8 = arith.constant 0 : index
    %c0_9 = arith.constant 0 : index
    %8 = vector.load %arg5[%c0_7, %c0_8, %c0_9] : memref<1x32x128xf32, #tpu.memory_space<vmem>>, vector<1x32x128xf32>
    %9 = vector.shape_cast %8 : vector<1x32x128xf32> to vector<32x128xf32>
    %10 = vector.shape_cast %7 : vector<32x128xf32> to vector<1x32x128xf32>
    tpu.vector_store %arg5[%c0_7, %c0_8, %c0_9], %10 {strides = array<i32>} : memref<1x32x128xf32, #tpu.memory_space<vmem>>, vector<1x32x128xf32>,
    return
  }
  func.func @transform_0(%arg0: i32, %arg1: i32) -> (i32, i32) {
    %c0_i32 = arith.constant 0 : i32
    %c0_i32_0 = arith.constant 0 : i32
    return %arg1, %c0_i32 : i32, i32
  }
  func.func @transform_1(%arg0: i32, %arg1: i32) -> (i32, i32, i32) {
    %c0_i32 = arith.constant 0 : i32
    %c0_i32_0 = arith.constant 0 : i32
    %c0_i32_1 = arith.constant 0 : i32
    return %arg0, %c0_i32, %c0_i32_0 : i32, i32, i32
  }
  func.func @transform_2(%arg0: i32, %arg1: i32) -> (i32, i32, i32) {
    %c0_i32 = arith.constant 0 : i32
    %c0_i32_0 = arith.constant 0 : i32
    %c0_i32_1 = arith.constant 0 : i32
    return %arg0, %c0_i32, %c0_i32_0 : i32, i32, i32
  }
  func.func @transform_3(%arg0: i32, %arg1: i32) -> (i32, i32, i32) {
    %c0_i32 = arith.constant 0 : i32
    %c0_i32_0 = arith.constant 0 : i32
    return %arg0, %arg1, %c0_i32 : i32, i32, i32
  }
}

module attributes {stable_mosaic.version = 11 : i64} {
  func.func @_matmul_bias_kernel(%arg0: i32, %arg1: i32, %arg2: memref<32x64xf32, #tpu.memory_space<vmem>>, %arg3: memref<1x64x128xf32, #tpu.memory_space<vmem>>, %arg4: memref<1x1x128xf32, #tpu.memory_space<vmem>>, %arg5: memref<1x32x128xf32, #tpu.memory_space<vmem>>) attributes {dimension_semantics = [#tpu.dimension_semantics<parallel>, #tpu.dimension_semantics<parallel>], iteration_bounds = array<i64: 2, 1>, scalar_prefetch = 0 : i64, scratch_operands = 0 : i64, tpu.core_type = #tpu.core_type<tc>, window_params = [{transform_indices = @transform_0, window_bounds = array<i64: 32, 64>}, {transform_indices = @transform_1, window_bounds = array<i64: 1, 64, 128>}, {transform_indices = @transform_2, window_bounds = array<i64: 1, 1, 128>}, {transform_indices = @transform_3, window_bounds = array<i64: 1, 32, 128>}]} {
    %c0 = arith.constant 0 : index
    %c0_0 = arith.constant 0 : index
    %0 = vector.load %arg2[%c0, %c0_0] : memref<32x64xf32, #tpu.memory_space<vmem>>, vector<32x64xf32>
    %c0_1 = arith.constant 0 : index
    %c0_2 = arith.constant 0 : index
    %c0_3 = arith.constant 0 : index
    %1 = vector.load %arg3[%c0_1, %c0_2, %c0_3] : memref<1x64x128xf32, #tpu.memory_space<vmem>>, vector<1x64x128xf32>
    %2 = vector.shape_cast %1 : vector<1x64x128xf32> to vector<64x128xf32>
    %cst = arith.constant dense<0.000000e+00> : vector<32x128xf32>
    %3 = tpu.matmul %0, %2, %cst {dimension_numbers = #tpu.dot_dimension_numbers<[1], [0], [0], [1], [0, 0, 1, 1], [], []>} : vector<32x64xf32>, vector<64x128xf32>, vector<32x128xf32> -> vector<32x128xf32>
    %c0_4 = arith.constant 0 : index
    %c0_5 = arith.constant 0 : index
    %c0_6 = arith.constant 0 : index
    %4 = vector.load %arg4[%c0_4, %c0_5, %c0_6] : memref<1x1x128xf32, #tpu.memory_space<vmem>>, vector<1x1x128xf32>
    %5 = vector.shape_cast %4 : vector<1x1x128xf32> to vector<1x128xf32>
    %6 = vector.broadcast %5 : vector<1x128xf32> to vector<32x128xf32>
    %7 = arith.addf %3, %6 : vector<32x128xf32>
    %c0_7 = arith.constant 0 : index
    %c0_8 = arith.constant 0 : index
    %c0_9 = arith.constant 0 : index
    %8 = vector.load %arg5[%c0_7, %c0_8, %c0_9] : memref<1x32x128xf32, #tpu.memory_space<vmem>>, vector<1x32x128xf32>
    %9 = vector.shape_cast %8 : vector<1x32x128xf32> to vector<32x128xf32>
    %10 = vector.shape_cast %7 : vector<32x128xf32> to vector<1x32x128xf32>
    tpu.vector_store %arg5[%c0_7, %c0_8, %c0_9], %10 {strides = array<i32>} : memref<1x32x128xf32, #tpu.memory_space<vmem>>, vector<1x32x128xf32>,
    return
  }
  func.func @transform_0(%arg0: i32, %arg1: i32) -> (i32, i32) {
    %c0_i32 = arith.constant 0 : i32
    %c0_i32_0 = arith.constant 0 : i32
    return %arg1, %c0_i32 : i32, i32
  }
  func.func @transform_1(%arg0: i32, %arg1: i32) -> (i32, i32, i32) {
    %c0_i32 = arith.constant 0 : i32
    %c0_i32_0 = arith.constant 0 : i32
    %c0_i32_1 = arith.constant 0 : i32
    return %arg0, %c0_i32, %c0_i32_0 : i32, i32, i32
  }
  func.func @transform_2(%arg0: i32, %arg1: i32) -> (i32, i32, i32) {
    %c0_i32 = arith.constant 0 : i32
    %c0_i32_0 = arith.constant 0 : i32
    %c0_i32_1 = arith.constant 0 : i32
    return %arg0, %c0_i32, %c0_i32_0 : i32, i32, i32
  }
  func.func @transform_3(%arg0: i32, %arg1: i32) -> (i32, i32, i32) {
    %c0_i32 = arith.constant 0 : i32
    %c0_i32_0 = arith.constant 0 : i32
    return %arg0, %arg1, %c0_i32 : i32, i32, i32
  }
}

module attributes {stable_mosaic.version = 11 : i64} {
  func.func @_linear_softmax_kernel(%arg0: i32, %arg1: memref<32x64xf32, #tpu.memory_space<vmem>>, %arg2: memref<64x128xf32, #tpu.memory_space<vmem>>, %arg3: memref<1x128xf32, #tpu.memory_space<vmem>>, %arg4: memref<32x128xf32, #tpu.memory_space<vmem>>) attributes {dimension_semantics = [#tpu.dimension_semantics<parallel>], iteration_bounds = array<i64: 1>, scalar_prefetch = 0 : i64, scratch_operands = 0 : i64, tpu.core_type = #tpu.core_type<tc>, window_params = [{transform_indices = @transform_0, window_bounds = array<i64: 32, 64>}, {pipeline_mode = #tpu.pipeline_mode<synchronous>, transform_indices = @transform_1, window_bounds = array<i64: 64, 128>}, {pipeline_mode = #tpu.pipeline_mode<synchronous>, transform_indices = @transform_2, window_bounds = array<i64: 1, 128>}, {transform_indices = @transform_3, window_bounds = array<i64: 32, 128>}]} {
    %c0 = arith.constant 0 : index
    %c0_0 = arith.constant 0 : index
    %0 = vector.load %arg1[%c0, %c0_0] : memref<32x64xf32, #tpu.memory_space<vmem>>, vector<32x64xf32>
    %c0_1 = arith.constant 0 : index
    %c0_2 = arith.constant 0 : index
    %1 = vector.load %arg2[%c0_1, %c0_2] : memref<64x128xf32, #tpu.memory_space<vmem>>, vector<64x128xf32>
    %cst = arith.constant dense<0.000000e+00> : vector<32x128xf32>
    %2 = tpu.matmul %0, %1, %cst {dimension_numbers = #tpu.dot_dimension_numbers<[1], [0], [0], [1], [0, 0, 1, 1], [], []>} : vector<32x64xf32>, vector<64x128xf32>, vector<32x128xf32> -> vector<32x128xf32>
    %c0_3 = arith.constant 0 : index
    %c0_4 = arith.constant 0 : index
    %3 = vector.load %arg3[%c0_3, %c0_4] : memref<1x128xf32, #tpu.memory_space<vmem>>, vector<1x128xf32>
    %4 = vector.broadcast %3 : vector<1x128xf32> to vector<32x128xf32>
    %5 = arith.addf %2, %4 : vector<32x128xf32>
    %cst_5 = arith.constant dense<0xFF800000> : vector<32xf32>
    %6 = vector.multi_reduction <maximumf>, %5, %cst_5 [1] : vector<32x128xf32> to vector<32xf32>
    %7 = vector.shape_cast %6 : vector<32xf32> to vector<32x1xf32>
    %8 = vector.broadcast %7 : vector<32x1xf32> to vector<32x128xf32>
    %9 = arith.subf %5, %8 : vector<32x128xf32>
    %10 = math.exp %9 : vector<32x128xf32>
    %cst_6 = arith.constant dense<0.000000e+00> : vector<32xf32>
    %11 = vector.multi_reduction <add>, %10, %cst_6 [1] : vector<32x128xf32> to vector<32xf32>
    %12 = vector.shape_cast %11 : vector<32xf32> to vector<32x1xf32>
    %13 = vector.broadcast %12 : vector<32x1xf32> to vector<32x128xf32>
    %14 = arith.divf %10, %13 : vector<32x128xf32>
    %c0_7 = arith.constant 0 : index
    %c0_8 = arith.constant 0 : index
    %15 = vector.load %arg4[%c0_7, %c0_8] : memref<32x128xf32, #tpu.memory_space<vmem>>, vector<32x128xf32>
    tpu.vector_store %arg4[%c0_7, %c0_8], %14 {strides = array<i32>} : memref<32x128xf32, #tpu.memory_space<vmem>>, vector<32x128xf32>,
    return
  }
  func.func @transform_0(%arg0: i32) -> (i32, i32) {
    %c0_i32 = arith.constant 0 : i32
    %c0_i32_0 = arith.constant 0 : i32
    return %arg0, %c0_i32 : i32, i32
  }
  func.func @transform_1(%arg0: i32) -> (i32, i32) {
    %c0_i32 = arith.constant 0 : i32
    %c0_i32_0 = arith.constant 0 : i32
    %c0_i32_1 = arith.constant 0 : i32
    return %c0_i32, %c0_i32_0 : i32, i32
  }
  func.func @transform_2(%arg0: i32) -> (i32, i32) {
    %c0_i32 = arith.constant 0 : i32
    %c0_i32_0 = arith.constant 0 : i32
    %c0_i32_1 = arith.constant 0 : i32
    return %c0_i32, %c0_i32_0 : i32, i32
  }
  func.func @transform_3(%arg0: i32) -> (i32, i32) {
    %c0_i32 = arith.constant 0 : i32
    %c0_i32_0 = arith.constant 0 : i32
    return %arg0, %c0_i32 : i32, i32
  }
}

</mosaic_0001>

<bundles_post_ra>
// kernel: lstm_decoder_forward.5
= control target key start
LH: loop header
LB: loop body
LE: loop exit
PB: predicated region body
PF: predicated region fallthrough
CT: control target
= control target key end

     0   :  { %s551_s12 = smov 0   ;;  %s553_s13 = smov 0   ;;  %s603_s0 = inlined_call_operand.vmem [shape: f32[32,4], index: 0, kind: input, shape index: {}]   ;;  %s604_s1 = inlined_call_operand.vmem [shape: f32[2,4,128], index: 1, kind: input, shape index: {}]   ;;  %s605_s2 = inlined_call_operand.vmem [shape: f32[2,1,128], index: 2, kind: input, shape index: {}]   ;;  %s606_s3 = inlined_call_operand.vmem [shape: f32[2,32,128], index: 3, kind: output, shape index: {}]  }
   0x1   :  { %s555_s14 = smov 0  }
   0x2 LB: > { %s25_s15 = sadd.s32 1, %s525_s13  ;;  %p455_p0 = scmp.ge.s32.totalorder %s529_s14, 1  ;;  %s529_s14 = sphi %s555_s14, %s13_s14   ;;  %s525_s13 = sphi %s553_s13, %s608_s13   ;;  %s521_s12 = sphi %s551_s12, %s607_s12  }
   0x3   : > { %p27_p1 = scmp.ge.s32.totalorder %s25_s15, 2  ;;  %p169_p2 = scmp.lt.s32.totalorder %s529_s14, 3 }
   0x5   : > { %s610_s15 = smov (%p27_p1, %s25_s15), 0  ;;  %p170_p3 = pnand %p455_p0, %p169_p2 }
   0x6   : > { %p210_p4 = scmp.lt.s32.totalorder (!%p170_p3), %s521_s12, 1  ;;  %v227_v0 = vld [vmem:[%s603_s0] sm:$0xff] (!%p170_p3)  ;;  %vm239_vm0 = vcmask (!%p170_p3), 31744   ;;  %v229_v1 = vld [vmem:[%s603_s0 + $0x10] sm:$0xff] (!%p170_p3)  ;;  %vm252_vm1 = vcmask (!%p170_p3), 1043456   ;;  %v228_v3 = vld [vmem:[%s603_s0 + $0x8] sm:$0xff] (!%p170_p3) }
   0x7   : > { %173 = sbr.rel (%p170_p3) target bundleno = 236 (0xec), region = 32  ;;  %475 = vmatprep.mubr.msk.f32.mxu0 (!%p170_p3), %vm239_vm0, %v227_v0  ;;  %478 = vmatprep.mubr.msk.f32.mxu1 (!%p170_p3), %vm239_vm0, %v229_v1  ;;  %v230_v4 = vld [vmem:[%s603_s0 + $0x18] sm:$0xff] (!%p170_p3) }
   0xe   : > { %s612_s12 = smov (!%p210_p4, %s521_s12), 1 }
   0xf   : > { %s456_s20 = sshll.u32 %s612_s12, 2  ;;  %s216_s30 = scalar_lea.vmem %s605_s2, %s612_s12 }
  0x10   : > { %s213_s23 = scalar_lea.vmem %s604_s1, %s456_s20  ;;  %s467_s4 = sshll.u32 %s612_s12, 5  ;;  %v459_v5 = vld [vmem:[%s216_s30] ss:$0 sm:$0xff] }
  0x11   : > { %v231_v2 = vld [vmem:[%s213_s23] sm:$0xf]  ;;  %s225_s7 = scalar_lea.vmem %s606_s3, %s467_s4 }
  0x12   : > { %473 = vmatprep.subr.msk.mxu0 %vm252_vm1, %v231_v2  ;;  %481 = vmatprep.subr.msk.mxu1 %vm252_vm1, %v231_v2 }
  0x13   : > { %474 = vmatpush3.msk.msra.mxu0 %vm252_vm1, %v231_v2  ;;  %482 = vmatpush3.msk.msra.mxu1 %vm252_vm1, %v231_v2 }
  0x14   : > { %476 = vmatmul.mubr.msk.f32.vlgmr.msra.gmra.mrb[0].mxu0 %vm239_vm0, %v228_v3  ;;  %479 = vmatmul.mubr.msk.f32.vlgmr.msra.gmra.mrb[0].mxu1 %vm239_vm0, %v230_v4 }
  0xe7   : > { %v477_v6 = vpop.f32.mrb[0].mxu0  ;;  %v480_v7 = vpop.f32.mrb[0].mxu1 }
  0xe8   : > { %v328_v8 = vadd.f32 %v477_v6, %v459_v5  ;;  %v338_v9 = vadd.f32 %v480_v7, %v459_v5  ;;  %v322_v10 = vpop.f32.mrb[1].mxu0  ;;  %v332_v11 = vpop.f32.mrb[1].mxu1 }
  0xe9   : > { %v323_v12 = vadd.f32 %v459_v5, %v322_v10  ;;  %v333_v13 = vadd.f32 %v459_v5, %v332_v11 }
  0xea   : > { %342 = vst [vmem:[%s225_s7 + $0x8] sm:$0xff] %v328_v8  ;;  %344 = vst [vmem:[%s225_s7 + $0x18] sm:$0xff] %v338_v9 }
  0xeb   : > { %341 = vst [vmem:[%s225_s7] sm:$0xff] %v323_v12  ;;  %343 = vst [vmem:[%s225_s7 + $0x10] sm:$0xff] %v333_v13 }
  0xec PF: > { %s13_s14 = sadd.s32 1, %s529_s14   ;;  %s607_s12 = smov %s525_s13 }
  0xed   : > { %p10_p5 = scmp.ge.s32.totalorder %s13_s14, 4   ;;  %s608_s13 = smov %s610_s15 }
  0xef   :  { %12 = sbr.rel (!%p10_p5) target bundleno = 2 (0x2), region = 68 }

// kernel: lstm_decoder_forward.7
= control target key start
LH: loop header
LB: loop body
LE: loop exit
PB: predicated region body
PF: predicated region fallthrough
CT: control target
= control target key end

     0   :  { %s601_s12 = smov 0   ;;  %s603_s13 = smov 0   ;;  %s658_s0 = inlined_call_operand.vmem [shape: f32[32,64], index: 0, kind: input, shape index: {}]   ;;  %s659_s1 = inlined_call_operand.vmem [shape: f32[2,64,128], index: 1, kind: input, shape index: {}]   ;;  %s660_s2 = inlined_call_operand.vmem [shape: f32[2,1,128], index: 2, kind: input, shape index: {}]   ;;  %s661_s3 = inlined_call_operand.vmem [shape: f32[2,32,128], index: 3, kind: output, shape index: {}]  }
   0x1   :  { %s605_s14 = smov 0  }
   0x2 LB: > { %s25_s15 = sadd.s32 1, %s575_s13  ;;  %p461_p0 = scmp.ge.s32.totalorder %s579_s14, 1  ;;  %s579_s14 = sphi %s605_s14, %s13_s14   ;;  %s575_s13 = sphi %s603_s13, %s663_s13   ;;  %s571_s12 = sphi %s601_s12, %s662_s12  }
   0x3   : > { %p27_p1 = scmp.ge.s32.totalorder %s25_s15, 2  ;;  %p170_p2 = scmp.lt.s32.totalorder %s579_s14, 3 }
   0x5   : > { %s665_s15 = smov (%p27_p1, %s25_s15), 0  ;;  %p171_p3 = pnand %p461_p0, %p170_p2 }
   0x6   : > { %p212_p4 = scmp.lt.s32.totalorder (!%p171_p3), %s571_s12, 1  ;;  %v230_v0 = vld [vmem:[%s658_s0] sm:$0xff] (!%p171_p3)  ;;  %vm249_vm0 = vcmask (!%p171_p3), 523264   ;;  %v232_v1 = vld [vmem:[%s658_s0 + $0x10] sm:$0xff] (!%p171_p3)  ;;  %v231_v14 = vld [vmem:[%s658_s0 + $0x8] sm:$0xff] (!%p171_p3) }
   0x7   : > { %174 = sbr.rel (%p171_p3) target bundleno = 252 (0xfc), region = 32  ;;  %503 = vmatprep.mubr.msk.f32.mxu0 (!%p171_p3), %vm249_vm0, %v230_v0  ;;  %506 = vmatprep.mubr.msk.f32.mxu1 (!%p171_p3), %vm249_vm0, %v232_v1  ;;  %v233_v15 = vld [vmem:[%s658_s0 + $0x18] sm:$0xff] (!%p171_p3) }
   0xe   : > { %s667_s12 = smov (!%p212_p4, %s571_s12), 1 }
   0xf   : > { %s473_s20 = sshll.u32 %s667_s12, 6  ;;  %s219_s30 = scalar_lea.vmem %s660_s2, %s667_s12 }
  0x10   : > { %s216_s23 = scalar_lea.vmem %s659_s1, %s473_s20  ;;  %s474_s4 = sshll.u32 %s667_s12, 5  ;;  %v466_v16 = vld [vmem:[%s219_s30] ss:$0 sm:$0xff] }
  0x11   : > { %v234_v2 = vld [vmem:[%s216_s23] sm:$0xff]  ;;  %v235_v3 = vld [vmem:[%s216_s23 + $0x8] sm:$0xff]  ;;  %v236_v4 = vld [vmem:[%s216_s23 + $0x10] sm:$0xff]  ;;  %s228_s7 = scalar_lea.vmem %s661_s3, %s474_s4 }
  0x12   : > { %v509_v5 = vpack.c.bf16 %v235_v3, %v234_v2  ;;  %v237_v6 = vld [vmem:[%s216_s23 + $0x18] sm:$0xff]  ;;  %v238_v8 = vld [vmem:[%s216_s23 + $0x20] sm:$0xff]  ;;  %v239_v9 = vld [vmem:[%s216_s23 + $0x28] sm:$0xff] }
  0x13   : > { %v513_v7 = vpack.c.bf16 %v237_v6, %v236_v4  ;;  %v517_v10 = vpack.c.bf16 %v239_v9, %v238_v8  ;;  %v240_v11 = vld [vmem:[%s216_s23 + $0x30] sm:$0xff]  ;;  %v241_v12 = vld [vmem:[%s216_s23 + $0x38] sm:$0xff] }
  0x14   : > { %510 = vmatprep.subr.bf16.mxu0 %v509_v5  ;;  %525 = vmatprep.subr.bf16.mxu1 %v509_v5  ;;  %v521_v13 = vpack.c.bf16 %v241_v12, %v240_v11 }
  0x15   : > { %512 = vmatpush3.bf16.msra.mxu0 %v509_v5  ;;  %529 = vmatpush3.bf16.msra.mxu1 %v509_v5 }
  0x16   : > { %514 = vmatprep.subr.bf16.mxu0 %v513_v7  ;;  %526 = vmatprep.subr.bf16.mxu1 %v513_v7 }
  0x19   : > { %516 = vmatpush3.bf16.msra.mxu0 %v513_v7  ;;  %530 = vmatpush3.bf16.msra.mxu1 %v513_v7 }
  0x1a   : > { %518 = vmatprep.subr.bf16.mxu0 %v517_v10  ;;  %527 = vmatprep.subr.bf16.mxu1 %v517_v10 }
  0x1d   : > { %520 = vmatpush3.bf16.msra.mxu0 %v517_v10  ;;  %531 = vmatpush3.bf16.msra.mxu1 %v517_v10 }
  0x1e   : > { %522 = vmatprep.subr.bf16.mxu0 %v521_v13  ;;  %528 = vmatprep.subr.bf16.mxu1 %v521_v13 }
  0x21   : > { %524 = vmatpush3.bf16.msra.mxu0 %v521_v13  ;;  %532 = vmatpush3.bf16.msra.mxu1 %v521_v13 }
  0x24   : > { %504 = vmatmul.mubr.msk.f32.vlgmr.msra.gmra.mrb[0].mxu0 %vm249_vm0, %v231_v14  ;;  %507 = vmatmul.mubr.msk.f32.vlgmr.msra.gmra.mrb[0].mxu1 %vm249_vm0, %v233_v15 }
  0xf7   : > { %v505_v17 = vpop.f32.mrb[0].mxu0  ;;  %v508_v18 = vpop.f32.mrb[0].mxu1 }
  0xf8   : > { %v334_v19 = vadd.f32 %v505_v17, %v466_v16  ;;  %v344_v20 = vadd.f32 %v508_v18, %v466_v16  ;;  %v328_v21 = vpop.f32.mrb[1].mxu0  ;;  %v338_v22 = vpop.f32.mrb[1].mxu1 }
  0xf9   : > { %v329_v23 = vadd.f32 %v466_v16, %v328_v21  ;;  %v339_v24 = vadd.f32 %v466_v16, %v338_v22 }
  0xfa   : > { %348 = vst [vmem:[%s228_s7 + $0x8] sm:$0xff] %v334_v19  ;;  %350 = vst [vmem:[%s228_s7 + $0x18] sm:$0xff] %v344_v20 }
  0xfb   : > { %347 = vst [vmem:[%s228_s7] sm:$0xff] %v329_v23  ;;  %349 = vst [vmem:[%s228_s7 + $0x10] sm:$0xff] %v339_v24 }
  0xfc PF: > { %s13_s14 = sadd.s32 1, %s579_s14   ;;  %s662_s12 = smov %s575_s13 }
  0xfd   : > { %p10_p5 = scmp.ge.s32.totalorder %s13_s14, 4   ;;  %s663_s13 = smov %s665_s15 }
  0xff   :  { %12 = sbr.rel (!%p10_p5) target bundleno = 2 (0x2), region = 68 }

// kernel: lstm_decoder_forward.9
= control target key start
LH: loop header
LB: loop body
LE: loop exit
PB: predicated region body
PF: predicated region fallthrough
CT: control target
= control target key end

     0   :  { %vm33_vm0 = vcmask 523264   ;;  %s329_s1 = inlined_call_operand.vmem [shape: f32[64,128], index: 1, kind: input, shape index: {}]   ;;  %s330_s0 = inlined_call_operand.vmem [shape: f32[32,64], index: 0, kind: input, shape index: {}]   ;;  %s331_s2 = inlined_call_operand.vmem [shape: f32[1,128], index: 2, kind: input, shape index: {}]   ;;  %s332_s3 = inlined_call_operand.vmem [shape: f32[32,128], index: 3, kind: output, shape index: {}]  }
   0x1   :  { %v18_v0 = vld [vmem:[%s329_s1] sm:$0xff]  ;;  %v19_v1 = vld [vmem:[%s329_s1 + $0x8] sm:$0xff]  ;;  %v20_v2 = vld [vmem:[%s329_s1 + $0x10] sm:$0xff] }
   0x2   :  { %v214_v3 = vpack.c.bf16 %v19_v1, %v18_v0  ;;  %v21_v4 = vld [vmem:[%s329_s1 + $0x18] sm:$0xff]  ;;  %v22_v6 = vld [vmem:[%s329_s1 + $0x20] sm:$0xff]  ;;  %v23_v7 = vld [vmem:[%s329_s1 + $0x28] sm:$0xff] }
   0x3   :  { %v218_v5 = vpack.c.bf16 %v21_v4, %v20_v2  ;;  %v14_v8 = vld [vmem:[%s330_s0] sm:$0xff]  ;;  %v16_v9 = vld [vmem:[%s330_s0 + $0x10] sm:$0xff]  ;;  %v222_v10 = vpack.c.bf16 %v23_v7, %v22_v6  ;;  %v25_v12 = vld [vmem:[%s329_s1 + $0x38] sm:$0xff] }
   0x4   :  { %215 = vmatprep.subr.bf16.mxu0 %v214_v3  ;;  %230 = vmatprep.subr.bf16.mxu1 %v214_v3  ;;  %v24_v11 = vld [vmem:[%s329_s1 + $0x30] sm:$0xff]  ;;  %v15_v14 = vld [vmem:[%s330_s0 + $0x8] sm:$0xff]  ;;  %v17_v15 = vld [vmem:[%s330_s0 + $0x18] sm:$0xff] }
   0x5   :  { %217 = vmatpush3.bf16.msra.mxu0 %v214_v3  ;;  %234 = vmatpush3.bf16.msra.mxu1 %v214_v3  ;;  %v226_v13 = vpack.c.bf16 %v25_v12, %v24_v11  ;;  %v175_v16 = vld [vmem:[%s331_s2] ss:$0 sm:$0xff] }
   0x6   :  { %219 = vmatprep.subr.bf16.mxu0 %v218_v5  ;;  %231 = vmatprep.subr.bf16.mxu1 %v218_v5 }
   0x7   :  { %208 = vmatprep.mubr.msk.f32.mxu0 %vm33_vm0, %v14_v8  ;;  %211 = vmatprep.mubr.msk.f32.mxu1 %vm33_vm0, %v16_v9 }
   0x9   :  { %221 = vmatpush3.bf16.msra.mxu0 %v218_v5  ;;  %235 = vmatpush3.bf16.msra.mxu1 %v218_v5 }
   0xa   :  { %223 = vmatprep.subr.bf16.mxu0 %v222_v10  ;;  %232 = vmatprep.subr.bf16.mxu1 %v222_v10 }
   0xd   :  { %225 = vmatpush3.bf16.msra.mxu0 %v222_v10  ;;  %236 = vmatpush3.bf16.msra.mxu1 %v222_v10 }
   0xe   :  { %227 = vmatprep.subr.bf16.mxu0 %v226_v13  ;;  %233 = vmatprep.subr.bf16.mxu1 %v226_v13 }
  0x11   :  { %229 = vmatpush3.bf16.msra.mxu0 %v226_v13  ;;  %237 = vmatpush3.bf16.msra.mxu1 %v226_v13 }
  0x14   :  { %209 = vmatmul.mubr.msk.f32.vlgmr.msra.gmra.mrb[0].mxu0 %vm33_vm0, %v15_v14  ;;  %212 = vmatmul.mubr.msk.f32.vlgmr.msra.gmra.mrb[0].mxu1 %vm33_vm0, %v17_v15 }
  0xe7   :  { %v210_v17 = vpop.f32.mrb[0].mxu0  ;;  %v213_v18 = vpop.f32.mrb[0].mxu1 }
  0xe8   :  { %v112_v19 = vpop.f32.mrb[1].mxu0  ;;  %v122_v20 = vpop.f32.mrb[1].mxu1  ;;  %v128_v23 = vadd.f32 %v213_v18, %v175_v16  ;;  %v118_v24 = vadd.f32 %v210_v17, %v175_v16 }
  0xe9   :  { %v113_v21 = vadd.f32 %v175_v16, %v112_v19  ;;  %v123_v22 = vadd.f32 %v175_v16, %v122_v20 }
  0xeb   :  { %135 = vmax.xlane.f32.xlu1 %v123_v22  ;;  %131 = vmax.xlane.f32.xlu0 %v113_v21 }
  0xef   :  { %137 = vmax.xlane.f32.xlu1 %v128_v23  ;;  %133 = vmax.xlane.f32.xlu0 %v118_v24 }
 0x178   :  { %v136_v25 = vpop.xlane.xlu1 %135  ;;  %v132_v26 = vpop.xlane.xlu0 %131 }
 0x179   :  { %v141_v27 = vsub.f32 %v123_v22, %v136_v25  ;;  %v139_v28 = vsub.f32 %v113_v21, %v132_v26 }
 0x17b   :  { %v143_v29 = vmul.f32 1.442695, %v139_v28  ;;  %v147_v32 = vmul.f32 1.442695, %v141_v27 }
 0x17c   :  { %v138_v30 = vpop.xlane.xlu1 %137  ;;  %v134_v31 = vpop.xlane.xlu0 %133 }
 0x17d   :  { %v140_v33 = vsub.f32 %v118_v24, %v134_v31  ;;  %238 = vpow2.f32 %v143_v29  ;;  %v142_v34 = vsub.f32 %v128_v23, %v138_v30 }
 0x17e   :  { %240 = vpow2.f32 %v147_v32 }
 0x17f   :  { %v145_v35 = vmul.f32 1.442695, %v140_v33  ;;  %v149_v36 = vmul.f32 1.442695, %v142_v34 }
 0x181   :  { %242 = vpow2.f32 %v145_v35 }
 0x182   :  { %244 = vpow2.f32 %v149_v36 }
 0x187   :  { %v239_v37 = vpop.eup %238 }
 0x188   :  { %151 = vadd.xlane.f32.xlu0 %v239_v37  ;;  %v241_v38 = vpop.eup %240 }
 0x18b   :  { %v243_v39 = vpop.eup %242 }
 0x18c   :  { %155 = vadd.xlane.f32.xlu0 %v241_v38  ;;  %153 = vadd.xlane.f32.xlu1 %v243_v39  ;;  %v245_v40 = vpop.eup %244 }
 0x190   :  { %157 = vadd.xlane.f32.xlu1 %v245_v40 }
 0x215   :  { %v152_v41 = vpop.xlane.xlu0 %151 }
 0x216   :  { %246 = vrcp.f32 %v152_v41 }
 0x219   :  { %v154_v42 = vpop.xlane.xlu1 %153  ;;  %v156_v43 = vpop.xlane.xlu0 %155 }
 0x21a   :  { %248 = vrcp.f32 %v154_v42 }
 0x21b   :  { %250 = vrcp.f32 %v156_v43 }
 0x21d   :  { %v158_v44 = vpop.xlane.xlu1 %157 }
 0x21e   :  { %252 = vrcp.f32 %v158_v44 }
 0x220   :  { %v247_v45 = vpop.eup %246 }
 0x221   :  { %v160_v46 = vmul.f32 %v247_v45, %v239_v37 }
 0x223   :  { %167 = vst [vmem:[%s332_s3] sm:$0xff] %v160_v46 }
 0x224   :  { %v249_v47 = vpop.eup %248 }
 0x225   :  { %v251_v48 = vpop.eup %250  ;;  %v162_v49 = vmul.f32 %v249_v47, %v243_v39 }
 0x226   :  { %v164_v50 = vmul.f32 %v251_v48, %v241_v38 }
 0x227   :  { %168 = vst [vmem:[%s332_s3 + $0x8] sm:$0xff] %v162_v49 }
 0x228   :  { %v253_v51 = vpop.eup %252  ;;  %169 = vst [vmem:[%s332_s3 + $0x10] sm:$0xff] %v164_v50 }
 0x229   :  { %v166_v52 = vmul.f32 %v253_v51, %v245_v40 }
 0x22b   :  { %170 = vst [vmem:[%s332_s3 + $0x18] sm:$0xff] %v166_v52 }

// kernel: lstm_decoder_forward.6
= control target key start
LH: loop header
LB: loop body
LE: loop exit
PB: predicated region body
PF: predicated region fallthrough
CT: control target
= control target key end

     0   :  { %s2925_s9 = smov 0   ;;  %s2927_s10 = smov 0   ;;  %s3307_s0 = inlined_call_operand.vmem [shape: f32[2,16,2,128], index: 0, kind: input, shape index: {}]   ;;  %s3308_s1 = inlined_call_operand.vmem [shape: f32[2,32,128], index: 1, kind: input, shape index: {}]   ;;  %s3309_s2 = inlined_call_operand.vmem [shape: f32[2,16,2,32], index: 2, kind: output, shape index: {}]  }
   0x1   :  { %s2929_s11 = smov 0  }
   0x2 LB: > { %s24_s12 = sadd.s32 1, %s2898_s10  ;;  %p2303_p0 = scmp.ge.s32.totalorder %s2902_s11, 1  ;;  %s2902_s11 = sphi %s2929_s11, %s12_s11   ;;  %s2898_s10 = sphi %s2927_s10, %s3311_s10   ;;  %s2894_s9 = sphi %s2925_s9, %s3310_s9  }
   0x3   : > { %p26_p1 = scmp.ge.s32.totalorder %s24_s12, 2  ;;  %p173_p2 = scmp.lt.s32.totalorder %s2902_s11, 3 }
   0x5   : > { %s3313_s12 = smov (%p26_p1, %s24_s12), 0  ;;  %p174_p3 = pnand %p2303_p0, %p173_p2 }
   0x6   : > { %p224_p4 = scmp.lt.s32.totalorder (!%p174_p3), %s2894_s9, 1  ;;  %s2947_s13 = sshll.u32 (!%p174_p3), %s2894_s9, 1  ;;  %vm269_vm0 = vcmask (!%p174_p3), 254976   ;;  %v2904_v0 = vmov (!%p174_p3), 0.0|0.0   ;;  %vm2905_vm1 = vmmov (!%p174_p3), 0   ;;  %v2906_v1 = vmov (!%p174_p3), 0.0  }
   0x7   : > { %177 = sbr.rel (%p174_p3) target bundleno = 11261 (0x2bfd), region = 28  ;;  %2626 = vmatprep.subr.bf16.mxu0 (!%p174_p3), %v2904_v0  ;;  %2458 = vmatprep.mubr.msk.f32.mxu0 (!%p174_p3), %vm2905_vm1, %v2906_v1  ;;  %s2954_s15 = scalar_lea.vmem (!%p174_p3), [#allocation2], %s2947_s13  ;;  %vm286_vm2 = vcmask (!%p174_p3), 261120  }
   0x8   : > { %270 = vst.msk [vmem:[%s2954_s15] sm:$0x3] (!%p174_p3), %vm269_vm0, %v2906_v1  ;;  %2632 = vmatprep.subr.bf16.mxu1 (!%p174_p3), %v2904_v0  ;;  %2469 = vmatprep.mubr.msk.f32.mxu1 (!%p174_p3), %vm2905_vm1, %v2906_v1  ;;  %s2989_s20 = scalar_lea.vmem (!%p174_p3), [#allocation3], %s2947_s13  ;;  %s2312_s21 = smul.u32 (!%p174_p3), 30, %s2894_s9 }
   0x9   : > { %272 = vst.msk [vmem:[%s2989_s20] sm:$0x3] (!%p174_p3), %vm269_vm0, %v2906_v1  ;;  %s2907_s26 = smov (!%p174_p3), 32   ;;  %s2908_s27 = smov (!%p174_p3), 64  }
   0xa   : > { %s397_s4 = smul.u32 (!%p174_p3), 14, %s2894_s9  ;;  %s3029_s5 = ssub.s32 (!%p174_p3), 1, %s2894_s9 }
   0xb   : > { %s2318_s17 = sshll.u32 (!%p174_p3), %s3029_s5, 1  ;;  %s614_s23 = smul.u32 (!%p174_p3), 3, %s3029_s5 }
   0xc   : > { %s3032_s6 = sadd.s32 (!%p174_p3), %s397_s4, %s3029_s5 }
   0xd   : > { %s2315_s7 = sshll.u32 (!%p174_p3), %s3032_s6, 1  ;;  %s724_s6 = smul.u32 (!%p174_p3), 11, %s2894_s9 }
   0xe   : > { %s225_s14 = scalar_select %p224_p4, %s2894_s9, 1 }
   0xf   : > { %v279_v8 = vld [vmem:[%s2954_s15] sm:$0x3] }
  0x10   : > { %s2962_s16 = sshll.u32 %s225_s14, 5  ;;  %v281_v14 = vld [vmem:[%s2989_s20] sm:$0x3] }
  0x11   : > { %s242_s19 = scalar_lea.vmem %s3308_s1, %s2962_s16  ;;  %s2999_s24 = scalar_lea.vmem %s3307_s0, %s2962_s16 }
  0x12   : > { %v273_v2 = vld [vmem:[%s242_s19] sm:$0xff]  ;;  %v274_v3 = vld [vmem:[%s242_s19 + $0x8] sm:$0xff]  ;;  %v275_v4 = vld [vmem:[%s242_s19 + $0x10] sm:$0xff]  ;;  %s284_s25 = scalar_lea.vmem %s2999_s24, %s2312_s21  ;;  %s3014_s30 = scalar_lea.vmem %s3309_s2, %s2962_s16 }
  0x13   : > { %v2968_v5 = vpack.c.bf16 %v274_v3, %v273_v2  ;;  %v276_v6 = vld [vmem:[%s242_s19 + $0x18] sm:$0xff]  ;;  %v285_v9 = vld [vmem:[%s284_s25] sm:$0x3]  ;;  %s393_s3 = scalar_lea.vmem %s3014_s30, %s2312_s21  ;;  %s400_s8 = scalar_lea.vmem %s2999_s24, %s2315_s7 }
  0x14   : > { %v2971_v7 = vpack.c.bf16 %v276_v6, %v275_v4  ;;  %v401_v29 = vld [vmem:[%s400_s8] sm:$0x3]  ;;  %s503_s14 = scalar_lea.vmem %s3014_s30, %s2315_s7  ;;  %s506_s16 = smul.u32 13, %s2894_s9 }
  0x15   : > { %2628 = vmatpush3.bf16.msra.mxu0 %v2968_v5  ;;  %2634 = vmatpush3.bf16.msra.mxu1 %v2968_v5  ;;  %s615_s25 = smul.u32 12, %s2894_s9  ;;  %s2325_s7 = sshll.u32 %s3029_s5, 2 }
  0x16   : > { %2629 = vmatprep.subr.bf16.mxu0 %v2904_v0  ;;  %2635 = vmatprep.subr.bf16.mxu1 %v2904_v0  ;;  %s3051_s18 = sadd.s32 %s2318_s17, %s506_s16  ;;  %s3089_s8 = sadd.s32 %s2325_s7, %s724_s6 }
  0x17   : > { %s2319_s19 = sshll.u32 %s3051_s18, 1  ;;  %s3070_s28 = sadd.s32 %s615_s25, %s614_s23 }
  0x18   : > { %s509_s21 = scalar_lea.vmem %s2999_s24, %s2319_s19  ;;  %s612_s22 = scalar_lea.vmem %s3014_s30, %s2319_s19 }
  0x19   : > { %2631 = vmatpush3.bf16.msra.mxu0 %v2971_v7  ;;  %2637 = vmatpush3.bf16.msra.mxu1 %v2971_v7  ;;  %v510_v47 = vld [vmem:[%s509_s21] sm:$0x3]  ;;  %s2322_s29 = sshll.u32 %s3070_s28, 1  ;;  %s832_s18 = smul.u32 5, %s3029_s5 }
  0x1a   : > { %2638 = vmatprep.subr.bf16.mxu0 %v2904_v0  ;;  %2644 = vmatprep.subr.bf16.mxu1 %v2904_v0  ;;  %s721_s4 = scalar_lea.vmem %s3014_s30, %s2322_s29  ;;  %s833_s19 = smul.u32 10, %s2894_s9 }
  0x1b   : > { %s941_s28 = smul.u32 6, %s3029_s5 }
  0x1c   : > { %2459 = vmatmul.mubr.msk.f32.vlgmr.msra.gmra.mrb[0].mxu0 %vm286_vm2, %v279_v8  ;;  %s3108_s21 = sadd.s32 %s833_s19, %s832_s18 }
  0x1d   : > { %2640 = vmatpush3.bf16.msra.mxu0 %v2968_v5  ;;  %2480 = vmatprep.mubr.msk.f32.mxu0 %vm2905_vm1, %v2906_v1 }
  0x1e   : > { %2641 = vmatprep.subr.bf16.mxu0 %v2904_v0 }
  0x21   : > { %2643 = vmatpush3.bf16.msra.mxu0 %v2971_v7 }
  0x22   : > { %2650 = vmatprep.subr.bf16.mxu0 %v2904_v0 }
  0xef   : > { %v356_v10 = vpop.f32.mrb[0].mxu0 }
  0xf0   : > { %v360_v11 = vadd.f32 %v356_v10, %v285_v9  ;;  %v2460_v12 = vpop.f32.mrb[1].mxu0 }
  0xf2   : > { %2752 = vtanh.f32 %v360_v11  ;;  %v2314_v15 = vmul.f32 -1.442695, %v360_v11 }
  0xf4   : > { %2754 = vpow2.f32 %v2314_v15 }
  0xfc   : > { %v2753_v13 = vpop.eup %2752 }
  0xfd   : > { %374 = vrot.lane.b32.xlu0 %v2753_v13, %s2907_s26 }
  0xfe   : > { %v2755_v16 = vpop.eup %2754 }
  0xff   : > { %v364_v17 = vadd.f32 1.0, %v2755_v16 }
 0x101   : > { %369 = vrot.lane.b32.xlu0 %v281_v14, %s2907_s26  ;;  %2756 = vrcp.f32 %v364_v17 }
 0x10b   : > { %v2757_v18 = vpop.eup %2756 }
 0x16f   : > { %v375_v19 = vpop.permute.xlu0 %374 }
 0x170   : > { %v377_v20 = vmul.f32 %v2757_v18, %v375_v19 }
 0x172   : > { %379 = vrot.lane.b32.xlu1 %v377_v20, %s2907_s26 }
 0x173   : > { %v370_v21 = vpop.permute.xlu0 %369 }
 0x174   : > { %v372_v22 = vmul.f32 %v2757_v18, %v370_v21 }
 0x1e4   : > { %v380_v23 = vpop.permute.xlu1 %379 }
 0x1e5   : > { %v382_v24 = vadd.f32 %v380_v23, %v372_v22 }
 0x1e7   : > { %2758 = vtanh.f32 %v382_v24 }
 0x1f1   : > { %v2759_v25 = vpop.eup %2758 }
 0x1f2   : > { %385 = vrot.lane.b32.xlu1 %v2759_v25, %s2907_s26 }
 0x264   : > { %v386_v26 = vpop.permute.xlu1 %385 }
 0x265   : > { %v388_v27 = vmul.f32 %v2757_v18, %v386_v26 }
 0x267   : > { %390 = vrot.lane.b32.xlu0 %v388_v27, %s2908_s27 }
 0x2d9   : > { %v391_v28 = vpop.permute.xlu0 %390 }
 0x2da   : > { %395 = vst.msk [vmem:[%s393_s3] sm:$0x3] %vm269_vm0, %v391_v28  ;;  %2470 = vmatmul.mubr.msk.f32.vlgmr.msra.gmra.mrb[0].mxu1 %vm286_vm2, %v391_v28  ;;  %s618_s3 = scalar_lea.vmem %s2999_s24, %s2322_s29  ;;  %s942_s29 = smul.u32 9, %s2894_s9 }
 0x2db   : > { %2646 = vmatpush3.bf16.msra.mxu1 %v2968_v5  ;;  %2491 = vmatprep.mubr.msk.f32.mxu1 %vm2905_vm1, %v2906_v1  ;;  %v619_v3 = vld [vmem:[%s618_s3] sm:$0x3] }
 0x2dc   : > { %2647 = vmatprep.subr.bf16.mxu1 %v2904_v0  ;;  %s3127_s3 = sadd.s32 %s942_s29, %s941_s28 }
 0x2df   : > { %2649 = vmatpush3.bf16.msra.mxu1 %v2971_v7 }
 0x2e0   : > { %2656 = vmatprep.subr.bf16.mxu1 %v2904_v0 }
 0x3ad   : > { %v470_v30 = vpop.f32.mrb[0].mxu1 }
 0x3ae   : > { %v474_v31 = vadd.f32 %v470_v30, %v401_v29  ;;  %v2471_v32 = vpop.f32.mrb[1].mxu1 }
 0x3b0   : > { %2760 = vtanh.f32 %v474_v31  ;;  %v2317_v34 = vmul.f32 -1.442695, %v474_v31 }
 0x3b2   : > { %2762 = vpow2.f32 %v2317_v34 }
 0x3ba   : > { %v2761_v33 = vpop.eup %2760 }
 0x3bb   : > { %484 = vrot.lane.b32.xlu1 %v2761_v33, %s2907_s26 }
 0x3bc   : > { %v2763_v35 = vpop.eup %2762 }
 0x3bd   : > { %v478_v36 = vadd.f32 1.0, %v2763_v35 }
 0x3bf   : > { %2764 = vrcp.f32 %v478_v36 }
 0x3c9   : > { %v2765_v37 = vpop.eup %2764 }
 0x3ca   : > { %v482_v40 = vmul.f32 %v2765_v37, %v382_v24 }
 0x42d   : > { %v485_v38 = vpop.permute.xlu1 %484 }
 0x42e   : > { %v487_v39 = vmul.f32 %v2765_v37, %v485_v38 }
 0x430   : > { %489 = vrot.lane.b32.xlu0 %v487_v39, %s2907_s26 }
 0x4a2   : > { %v490_v41 = vpop.permute.xlu0 %489 }
 0x4a3   : > { %v492_v42 = vadd.f32 %v490_v41, %v482_v40 }
 0x4a5   : > { %2766 = vtanh.f32 %v492_v42 }
 0x4af   : > { %v2767_v43 = vpop.eup %2766 }
 0x4b0   : > { %495 = vrot.lane.b32.xlu1 %v2767_v43, %s2907_s26 }
 0x522   : > { %v496_v44 = vpop.permute.xlu1 %495 }
 0x523   : > { %v498_v45 = vmul.f32 %v2765_v37, %v496_v44 }
 0x525   : > { %500 = vrot.lane.b32.xlu0 %v498_v45, %s2908_s27 }
 0x597   : > { %v501_v46 = vpop.permute.xlu0 %500 }
 0x598   : > { %504 = vst.msk [vmem:[%s503_s14] sm:$0x3] %vm269_vm0, %v501_v46  ;;  %2481 = vmatmul.mubr.msk.f32.vlgmr.msra.gmra.mrb[2].mxu0 %vm286_vm2, %v501_v46  ;;  %s2326_s14 = sshll.u32 %s3089_s8, 1  ;;  %s1050_s8 = smul.u32 7, %s3029_s5 }
 0x599   : > { %2652 = vmatpush3.bf16.msra.mxu0 %v2968_v5  ;;  %2502 = vmatprep.mubr.msk.f32.mxu0 %vm2905_vm1, %v2906_v1  ;;  %s727_s16 = scalar_lea.vmem %s2999_s24, %s2326_s14  ;;  %s830_s17 = scalar_lea.vmem %s3014_s30, %s2326_s14 }
 0x59a   : > { %2653 = vmatprep.subr.bf16.mxu0 %v2904_v0  ;;  %v728_v23 = vld [vmem:[%s727_s16] sm:$0x3]  ;;  %s2335_s14 = sshll.u32 %s2894_s9, 3 }
 0x59b   : > { %s3146_s16 = sadd.s32 %s2335_s14, %s1050_s8 }
 0x59d   : > { %2655 = vmatpush3.bf16.msra.mxu0 %v2971_v7 }
 0x59e   : > { %2662 = vmatprep.subr.bf16.mxu0 %v2904_v0 }
 0x66b   : > { %v579_v48 = vpop.f32.mrb[2].mxu0 }
 0x66c   : > { %v583_v49 = vadd.f32 %v579_v48, %v510_v47  ;;  %v2482_v50 = vpop.f32.mrb[3].mxu0 }
 0x66e   : > { %2768 = vtanh.f32 %v583_v49  ;;  %v2321_v52 = vmul.f32 -1.442695, %v583_v49 }
 0x670   : > { %2770 = vpow2.f32 %v2321_v52 }
 0x678   : > { %v2769_v51 = vpop.eup %2768 }
 0x679   : > { %593 = vrot.lane.b32.xlu1 %v2769_v51, %s2907_s26 }
 0x67a   : > { %v2771_v53 = vpop.eup %2770 }
 0x67b   : > { %v587_v54 = vadd.f32 1.0, %v2771_v53 }
 0x67d   : > { %2772 = vrcp.f32 %v587_v54 }
 0x687   : > { %v2773_v55 = vpop.eup %2772 }
 0x688   : > { %v591_v58 = vmul.f32 %v2773_v55, %v492_v42 }
 0x6eb   : > { %v594_v56 = vpop.permute.xlu1 %593 }
 0x6ec   : > { %v596_v57 = vmul.f32 %v2773_v55, %v594_v56 }
 0x6ee   : > { %598 = vrot.lane.b32.xlu0 %v596_v57, %s2907_s26 }
 0x760   : > { %v599_v59 = vpop.permute.xlu0 %598 }
 0x761   : > { %v601_v60 = vadd.f32 %v599_v59, %v591_v58 }
 0x763   : > { %2774 = vtanh.f32 %v601_v60 }
 0x76d   : > { %v2775_v61 = vpop.eup %2774 }
 0x76e   : > { %604 = vrot.lane.b32.xlu1 %v2775_v61, %s2907_s26 }
 0x7e0   : > { %v605_v62 = vpop.permute.xlu1 %604 }
 0x7e1   : > { %v607_v63 = vmul.f32 %v2773_v55, %v605_v62 }
 0x7e3   : > { %609 = vrot.lane.b32.xlu0 %v607_v63, %s2908_s27 }
 0x855   : > { %v610_v2 = vpop.permute.xlu0 %609 }
 0x856   : > { %613 = vst.msk [vmem:[%s612_s22] sm:$0x3] %vm269_vm0, %v610_v2  ;;  %2492 = vmatmul.mubr.msk.f32.vlgmr.msra.gmra.mrb[2].mxu1 %vm286_vm2, %v610_v2  ;;  %s2329_s22 = sshll.u32 %s3108_s21, 1  ;;  %s1160_s21 = smul.u32 7, %s2894_s9 }
 0x857   : > { %2658 = vmatpush3.bf16.msra.mxu1 %v2968_v5  ;;  %2513 = vmatprep.mubr.msk.f32.mxu1 %vm2905_vm1, %v2906_v1  ;;  %s836_s23 = scalar_lea.vmem %s2999_s24, %s2329_s22  ;;  %s939_s25 = scalar_lea.vmem %s3014_s30, %s2329_s22 }
 0x858   : > { %2659 = vmatprep.subr.bf16.mxu1 %v2904_v0  ;;  %v837_v41 = vld [vmem:[%s836_s23] sm:$0x3]  ;;  %s2339_s22 = sshll.u32 %s3029_s5, 3 }
 0x859   : > { %s3165_s23 = sadd.s32 %s2339_s22, %s1160_s21 }
 0x85b   : > { %2661 = vmatpush3.bf16.msra.mxu1 %v2971_v7 }
 0x85c   : > { %2668 = vmatprep.subr.bf16.mxu1 %v2904_v0 }
 0x929   : > { %v688_v4 = vpop.f32.mrb[2].mxu1 }
 0x92a   : > { %v692_v6 = vadd.f32 %v688_v4, %v619_v3  ;;  %v2493_v8 = vpop.f32.mrb[3].mxu1 }
 0x92c   : > { %2776 = vtanh.f32 %v692_v6  ;;  %v2324_v10 = vmul.f32 -1.442695, %v692_v6 }
 0x92e   : > { %2778 = vpow2.f32 %v2324_v10 }
 0x936   : > { %v2777_v9 = vpop.eup %2776 }
 0x937   : > { %702 = vrot.lane.b32.xlu1 %v2777_v9, %s2907_s26 }
 0x938   : > { %v2779_v11 = vpop.eup %2778 }
 0x939   : > { %v696_v12 = vadd.f32 1.0, %v2779_v11 }
 0x93b   : > { %2780 = vrcp.f32 %v696_v12 }
 0x945   : > { %v2781_v13 = vpop.eup %2780 }
 0x946   : > { %v700_v16 = vmul.f32 %v2781_v13, %v601_v60 }
 0x9a9   : > { %v703_v14 = vpop.permute.xlu1 %702 }
 0x9aa   : > { %v705_v15 = vmul.f32 %v2781_v13, %v703_v14 }
 0x9ac   : > { %707 = vrot.lane.b32.xlu0 %v705_v15, %s2907_s26 }
 0xa1e   : > { %v708_v17 = vpop.permute.xlu0 %707 }
 0xa1f   : > { %v710_v18 = vadd.f32 %v708_v17, %v700_v16 }
 0xa21   : > { %2782 = vtanh.f32 %v710_v18 }
 0xa2b   : > { %v2783_v19 = vpop.eup %2782 }
 0xa2c   : > { %713 = vrot.lane.b32.xlu1 %v2783_v19, %s2907_s26 }
 0xa9e   : > { %v714_v20 = vpop.permute.xlu1 %713 }
 0xa9f   : > { %v716_v21 = vmul.f32 %v2781_v13, %v714_v20 }
 0xaa1   : > { %718 = vrot.lane.b32.xlu0 %v716_v21, %s2908_s27 }
 0xb13   : > { %v719_v22 = vpop.permute.xlu0 %718 }
 0xb14   : > { %722 = vst.msk [vmem:[%s721_s4] sm:$0x3] %vm269_vm0, %v719_v22  ;;  %2503 = vmatmul.mubr.msk.f32.vlgmr.msra.gmra.mrb[4].mxu0 %vm286_vm2, %v719_v22  ;;  %s2332_s4 = sshll.u32 %s3127_s3, 1  ;;  %s1268_s3 = smul.u32 9, %s3029_s5 }
 0xb15   : > { %2664 = vmatpush3.bf16.msra.mxu0 %v2968_v5  ;;  %2524 = vmatprep.mubr.msk.f32.mxu0 %vm2905_vm1, %v2906_v1  ;;  %s945_s6 = scalar_lea.vmem %s2999_s24, %s2332_s4  ;;  %s1048_s7 = scalar_lea.vmem %s3014_s30, %s2332_s4 }
 0xb16   : > { %2665 = vmatprep.subr.bf16.mxu0 %v2904_v0  ;;  %v946_v59 = vld [vmem:[%s945_s6] sm:$0x3]  ;;  %s1269_s4 = smul.u32 6, %s2894_s9 }
 0xb18   : > { %s3184_s6 = sadd.s32 %s1269_s4, %s1268_s3 }
 0xb19   : > { %2667 = vmatpush3.bf16.msra.mxu0 %v2971_v7 }
 0xb1a   : > { %2674 = vmatprep.subr.bf16.mxu0 %v2904_v0 }
 0xbe7   : > { %v797_v24 = vpop.f32.mrb[4].mxu0 }
 0xbe8   : > { %v801_v25 = vadd.f32 %v797_v24, %v728_v23  ;;  %v2504_v26 = vpop.f32.mrb[5].mxu0 }
 0xbea   : > { %2784 = vtanh.f32 %v801_v25  ;;  %v2328_v28 = vmul.f32 -1.442695, %v801_v25 }
 0xbec   : > { %2786 = vpow2.f32 %v2328_v28 }
 0xbf4   : > { %v2785_v27 = vpop.eup %2784 }
 0xbf5   : > { %811 = vrot.lane.b32.xlu1 %v2785_v27, %s2907_s26 }
 0xbf6   : > { %v2787_v29 = vpop.eup %2786 }
 0xbf7   : > { %v805_v30 = vadd.f32 1.0, %v2787_v29 }
 0xbf9   : > { %2788 = vrcp.f32 %v805_v30 }
 0xc03   : > { %v2789_v31 = vpop.eup %2788 }
 0xc04   : > { %v809_v34 = vmul.f32 %v2789_v31, %v710_v18 }
 0xc67   : > { %v812_v32 = vpop.permute.xlu1 %811 }
 0xc68   : > { %v814_v33 = vmul.f32 %v2789_v31, %v812_v32 }
 0xc6a   : > { %816 = vrot.lane.b32.xlu0 %v814_v33, %s2907_s26 }
 0xcdc   : > { %v817_v35 = vpop.permute.xlu0 %816 }
 0xcdd   : > { %v819_v36 = vadd.f32 %v817_v35, %v809_v34 }
 0xcdf   : > { %2790 = vtanh.f32 %v819_v36 }
 0xce9   : > { %v2791_v37 = vpop.eup %2790 }
 0xcea   : > { %822 = vrot.lane.b32.xlu1 %v2791_v37, %s2907_s26 }
 0xd5c   : > { %v823_v38 = vpop.permute.xlu1 %822 }
 0xd5d   : > { %v825_v39 = vmul.f32 %v2789_v31, %v823_v38 }
 0xd5f   : > { %827 = vrot.lane.b32.xlu0 %v825_v39, %s2908_s27 }
 0xdd1   : > { %v828_v40 = vpop.permute.xlu0 %827 }
 0xdd2   : > { %831 = vst.msk [vmem:[%s830_s17] sm:$0x3] %vm269_vm0, %v828_v40  ;;  %2514 = vmatmul.mubr.msk.f32.vlgmr.msra.gmra.mrb[4].mxu1 %vm286_vm2, %v828_v40  ;;  %s2336_s17 = sshll.u32 %s3146_s16, 1  ;;  %s1377_s16 = smul.u32 10, %s3029_s5 }
 0xdd3   : > { %2670 = vmatpush3.bf16.msra.mxu1 %v2968_v5  ;;  %2535 = vmatprep.mubr.msk.f32.mxu1 %vm2905_vm1, %v2906_v1  ;;  %s1054_s18 = scalar_lea.vmem %s2999_s24, %s2336_s17  ;;  %s1157_s19 = scalar_lea.vmem %s3014_s30, %s2336_s17 }
 0xdd4   : > { %2671 = vmatprep.subr.bf16.mxu1 %v2904_v0  ;;  %v1055_v17 = vld [vmem:[%s1054_s18] sm:$0x3]  ;;  %s1378_s17 = smul.u32 5, %s2894_s9 }
 0xdd6   : > { %s3203_s18 = sadd.s32 %s1378_s17, %s1377_s16 }
 0xdd7   : > { %2673 = vmatpush3.bf16.msra.mxu1 %v2971_v7 }
 0xdd8   : > { %2680 = vmatprep.subr.bf16.mxu1 %v2904_v0 }
 0xea5   : > { %v906_v42 = vpop.f32.mrb[4].mxu1 }
 0xea6   : > { %v910_v43 = vadd.f32 %v906_v42, %v837_v41  ;;  %v2515_v44 = vpop.f32.mrb[5].mxu1 }
 0xea8   : > { %2792 = vtanh.f32 %v910_v43  ;;  %v2331_v46 = vmul.f32 -1.442695, %v910_v43 }
 0xeaa   : > { %2794 = vpow2.f32 %v2331_v46 }
 0xeb2   : > { %v2793_v45 = vpop.eup %2792 }
 0xeb3   : > { %920 = vrot.lane.b32.xlu1 %v2793_v45, %s2907_s26 }
 0xeb4   : > { %v2795_v47 = vpop.eup %2794 }
 0xeb5   : > { %v914_v48 = vadd.f32 1.0, %v2795_v47 }
 0xeb7   : > { %2796 = vrcp.f32 %v914_v48 }
 0xec1   : > { %v2797_v49 = vpop.eup %2796 }
 0xec2   : > { %v918_v52 = vmul.f32 %v2797_v49, %v819_v36 }
 0xf25   : > { %v921_v50 = vpop.permute.xlu1 %920 }
 0xf26   : > { %v923_v51 = vmul.f32 %v2797_v49, %v921_v50 }
 0xf28   : > { %925 = vrot.lane.b32.xlu0 %v923_v51, %s2907_s26 }
 0xf9a   : > { %v926_v53 = vpop.permute.xlu0 %925 }
 0xf9b   : > { %v928_v54 = vadd.f32 %v926_v53, %v918_v52 }
 0xf9d   : > { %2798 = vtanh.f32 %v928_v54 }
 0xfa7   : > { %v2799_v55 = vpop.eup %2798 }
 0xfa8   : > { %931 = vrot.lane.b32.xlu1 %v2799_v55, %s2907_s26 }
0x101a   : > { %v932_v56 = vpop.permute.xlu1 %931 }
0x101b   : > { %v934_v57 = vmul.f32 %v2797_v49, %v932_v56 }
0x101d   : > { %936 = vrot.lane.b32.xlu0 %v934_v57, %s2908_s27 }
0x108f   : > { %v937_v58 = vpop.permute.xlu0 %936 }
0x1090   : > { %940 = vst.msk [vmem:[%s939_s25] sm:$0x3] %vm269_vm0, %v937_v58  ;;  %2525 = vmatmul.mubr.msk.f32.vlgmr.msra.gmra.mrb[6].mxu0 %vm286_vm2, %v937_v58  ;;  %s2340_s25 = sshll.u32 %s3165_s23, 1  ;;  %s1486_s23 = smul.u32 11, %s3029_s5 }
0x1091   : > { %2676 = vmatpush3.bf16.msra.mxu0 %v2968_v5  ;;  %2546 = vmatprep.mubr.msk.f32.mxu0 %vm2905_vm1, %v2906_v1  ;;  %s1163_s28 = scalar_lea.vmem %s2999_s24, %s2340_s25  ;;  %s1266_s29 = scalar_lea.vmem %s3014_s30, %s2340_s25 }
0x1092   : > { %2677 = vmatprep.subr.bf16.mxu0 %v2904_v0  ;;  %v1164_v35 = vld [vmem:[%s1163_s28] sm:$0x3]  ;;  %s2349_s25 = sshll.u32 %s2894_s9, 2 }
0x1093   : > { %s3222_s28 = sadd.s32 %s2349_s25, %s1486_s23  ;;  %s1812_s23 = smul.u32 14, %s3029_s5 }
0x1095   : > { %2679 = vmatpush3.bf16.msra.mxu0 %v2971_v7  ;;  %s3271_s25 = sadd.s32 %s2894_s9, %s1812_s23 }
0x1096   : > { %2686 = vmatprep.subr.bf16.mxu0 %v2904_v0 }
0x1163   : > { %v1015_v60 = vpop.f32.mrb[6].mxu0 }
0x1164   : > { %v1019_v61 = vadd.f32 %v1015_v60, %v946_v59  ;;  %v2526_v62 = vpop.f32.mrb[7].mxu0 }
0x1166   : > { %2800 = vtanh.f32 %v1019_v61  ;;  %v2334_v2 = vmul.f32 -1.442695, %v1019_v61 }
0x1168   : > { %2802 = vpow2.f32 %v2334_v2 }
0x1170   : > { %v2801_v63 = vpop.eup %2800 }
0x1171   : > { %1029 = vrot.lane.b32.xlu1 %v2801_v63, %s2907_s26 }
0x1172   : > { %v2803_v3 = vpop.eup %2802 }
0x1173   : > { %v1023_v4 = vadd.f32 1.0, %v2803_v3 }
0x1175   : > { %2804 = vrcp.f32 %v1023_v4 }
0x117f   : > { %v2805_v6 = vpop.eup %2804 }
0x1180   : > { %v1027_v10 = vmul.f32 %v2805_v6, %v928_v54 }
0x11e3   : > { %v1030_v8 = vpop.permute.xlu1 %1029 }
0x11e4   : > { %v1032_v9 = vmul.f32 %v2805_v6, %v1030_v8 }
0x11e6   : > { %1034 = vrot.lane.b32.xlu0 %v1032_v9, %s2907_s26 }
0x1258   : > { %v1035_v11 = vpop.permute.xlu0 %1034 }
0x1259   : > { %v1037_v12 = vadd.f32 %v1035_v11, %v1027_v10 }
0x125b   : > { %2806 = vtanh.f32 %v1037_v12 }
0x1265   : > { %v2807_v13 = vpop.eup %2806 }
0x1266   : > { %1040 = vrot.lane.b32.xlu1 %v2807_v13, %s2907_s26 }
0x12d8   : > { %v1041_v14 = vpop.permute.xlu1 %1040 }
0x12d9   : > { %v1043_v15 = vmul.f32 %v2805_v6, %v1041_v14 }
0x12db   : > { %1045 = vrot.lane.b32.xlu0 %v1043_v15, %s2908_s27 }
0x134d   : > { %v1046_v16 = vpop.permute.xlu0 %1045 }
0x134e   : > { %1049 = vst.msk [vmem:[%s1048_s7] sm:$0x3] %vm269_vm0, %v1046_v16  ;;  %2536 = vmatmul.mubr.msk.f32.vlgmr.msra.gmra.mrb[6].mxu1 %vm286_vm2, %v1046_v16  ;;  %s2343_s7 = sshll.u32 %s3184_s6, 1  ;;  %s1595_s6 = smul.u32 12, %s3029_s5 }
0x134f   : > { %2682 = vmatpush3.bf16.msra.mxu1 %v2968_v5  ;;  %2557 = vmatprep.mubr.msk.f32.mxu1 %vm2905_vm1, %v2906_v1  ;;  %s1272_s8 = scalar_lea.vmem %s2999_s24, %s2343_s7  ;;  %s1375_s14 = scalar_lea.vmem %s3014_s30, %s2343_s7 }
0x1350   : > { %2683 = vmatprep.subr.bf16.mxu1 %v2904_v0  ;;  %v1273_v53 = vld [vmem:[%s1272_s8] sm:$0x3]  ;;  %s1596_s7 = smul.u32 3, %s2894_s9 }
0x1352   : > { %s3240_s8 = sadd.s32 %s1596_s7, %s1595_s6 }
0x1353   : > { %2685 = vmatpush3.bf16.msra.mxu1 %v2971_v7 }
0x1354   : > { %2692 = vmatprep.subr.bf16.mxu1 %v2904_v0 }
0x1421   : > { %v1124_v18 = vpop.f32.mrb[6].mxu1 }
0x1422   : > { %v1128_v19 = vadd.f32 %v1124_v18, %v1055_v17  ;;  %v2537_v20 = vpop.f32.mrb[7].mxu1 }
0x1424   : > { %2808 = vtanh.f32 %v1128_v19  ;;  %v2338_v22 = vmul.f32 -1.442695, %v1128_v19 }
0x1426   : > { %2810 = vpow2.f32 %v2338_v22 }
0x142e   : > { %v2809_v21 = vpop.eup %2808 }
0x142f   : > { %1138 = vrot.lane.b32.xlu1 %v2809_v21, %s2907_s26 }
0x1430   : > { %v2811_v23 = vpop.eup %2810 }
0x1431   : > { %v1132_v24 = vadd.f32 1.0, %v2811_v23 }
0x1433   : > { %2812 = vrcp.f32 %v1132_v24 }
0x143d   : > { %v2813_v25 = vpop.eup %2812 }
0x143e   : > { %v1136_v28 = vmul.f32 %v2813_v25, %v1037_v12 }
0x14a1   : > { %v1139_v26 = vpop.permute.xlu1 %1138 }
0x14a2   : > { %v1141_v27 = vmul.f32 %v2813_v25, %v1139_v26 }
0x14a4   : > { %1143 = vrot.lane.b32.xlu0 %v1141_v27, %s2907_s26 }
0x1516   : > { %v1144_v29 = vpop.permute.xlu0 %1143 }
0x1517   : > { %v1146_v30 = vadd.f32 %v1144_v29, %v1136_v28 }
0x1519   : > { %2814 = vtanh.f32 %v1146_v30 }
0x1523   : > { %v2815_v31 = vpop.eup %2814 }
0x1524   : > { %1149 = vrot.lane.b32.xlu1 %v2815_v31, %s2907_s26 }
0x1596   : > { %v1150_v32 = vpop.permute.xlu1 %1149 }
0x1597   : > { %v1152_v33 = vmul.f32 %v2813_v25, %v1150_v32 }
0x1599   : > { %1154 = vrot.lane.b32.xlu0 %v1152_v33, %s2908_s27 }
0x160b   : > { %v1155_v34 = vpop.permute.xlu0 %1154 }
0x160c   : > { %1158 = vst.msk [vmem:[%s1157_s19] sm:$0x3] %vm269_vm0, %v1155_v34  ;;  %2547 = vmatmul.mubr.msk.f32.vlgmr.msra.gmra.mrb[8].mxu0 %vm286_vm2, %v1155_v34  ;;  %s2346_s19 = sshll.u32 %s3203_s18, 1  ;;  %s1704_s18 = smul.u32 13, %s3029_s5 }
0x160d   : > { %2688 = vmatpush3.bf16.msra.mxu0 %v2968_v5  ;;  %2568 = vmatprep.mubr.msk.f32.mxu0 %vm2905_vm1, %v2906_v1  ;;  %s1381_s21 = scalar_lea.vmem %s2999_s24, %s2346_s19  ;;  %s1484_s22 = scalar_lea.vmem %s3014_s30, %s2346_s19 }
0x160e   : > { %2689 = vmatprep.subr.bf16.mxu0 %v2904_v0  ;;  %v1382_v11 = vld [vmem:[%s1381_s21] sm:$0x3]  ;;  %s3258_s19 = sadd.s32 %s2947_s13, %s1704_s18 }
0x160f   : > { %s2356_s21 = sshll.u32 %s3258_s19, 1 }
0x1610   : > { %s1810_s13 = scalar_lea.vmem %s3014_s30, %s2356_s21 }
0x1611   : > { %2691 = vmatpush3.bf16.msra.mxu0 %v2971_v7 }
0x1612   : > { %2698 = vmatprep.subr.bf16.mxu0 %v2904_v0 }
0x16df   : > { %v1233_v36 = vpop.f32.mrb[8].mxu0 }
0x16e0   : > { %v1237_v37 = vadd.f32 %v1233_v36, %v1164_v35  ;;  %v2548_v38 = vpop.f32.mrb[9].mxu0 }
0x16e2   : > { %2816 = vtanh.f32 %v1237_v37  ;;  %v2342_v40 = vmul.f32 -1.442695, %v1237_v37 }
0x16e4   : > { %2818 = vpow2.f32 %v2342_v40 }
0x16ec   : > { %v2817_v39 = vpop.eup %2816 }
0x16ed   : > { %1247 = vrot.lane.b32.xlu1 %v2817_v39, %s2907_s26 }
0x16ee   : > { %v2819_v41 = vpop.eup %2818 }
0x16ef   : > { %v1241_v42 = vadd.f32 1.0, %v2819_v41 }
0x16f1   : > { %2820 = vrcp.f32 %v1241_v42 }
0x16fb   : > { %v2821_v43 = vpop.eup %2820 }
0x16fc   : > { %v1245_v46 = vmul.f32 %v2821_v43, %v1146_v30 }
0x175f   : > { %v1248_v44 = vpop.permute.xlu1 %1247 }
0x1760   : > { %v1250_v45 = vmul.f32 %v2821_v43, %v1248_v44 }
0x1762   : > { %1252 = vrot.lane.b32.xlu0 %v1250_v45, %s2907_s26 }
0x17d4   : > { %v1253_v47 = vpop.permute.xlu0 %1252 }
0x17d5   : > { %v1255_v48 = vadd.f32 %v1253_v47, %v1245_v46 }
0x17d7   : > { %2822 = vtanh.f32 %v1255_v48 }
0x17e1   : > { %v2823_v49 = vpop.eup %2822 }
0x17e2   : > { %1258 = vrot.lane.b32.xlu1 %v2823_v49, %s2907_s26 }
0x1854   : > { %v1259_v50 = vpop.permute.xlu1 %1258 }
0x1855   : > { %v1261_v51 = vmul.f32 %v2821_v43, %v1259_v50 }
0x1857   : > { %1263 = vrot.lane.b32.xlu0 %v1261_v51, %s2908_s27 }
0x18c9   : > { %v1264_v52 = vpop.permute.xlu0 %1263 }
0x18ca   : > { %1267 = vst.msk [vmem:[%s1266_s29] sm:$0x3] %vm269_vm0, %v1264_v52  ;;  %2558 = vmatmul.mubr.msk.f32.vlgmr.msra.gmra.mrb[8].mxu1 %vm286_vm2, %v1264_v52  ;;  %s2350_s29 = sshll.u32 %s3222_s28, 1  ;;  %s2359_s28 = sshll.u32 %s3271_s25, 1 }
0x18cb   : > { %2694 = vmatpush3.bf16.msra.mxu1 %v2968_v5  ;;  %2579 = vmatprep.mubr.msk.f32.mxu1 %vm2905_vm1, %v2906_v1  ;;  %s1490_s3 = scalar_lea.vmem %s2999_s24, %s2350_s29  ;;  %s1593_s4 = scalar_lea.vmem %s3014_s30, %s2350_s29 }
0x18cc   : > { %2695 = vmatprep.subr.bf16.mxu1 %v2904_v0  ;;  %v1491_v29 = vld [vmem:[%s1490_s3] sm:$0x3]  ;;  %s1815_s29 = scalar_lea.vmem %s2999_s24, %s2359_s28  ;;  %s1918_s9 = scalar_lea.vmem %s3014_s30, %s2359_s28 }
0x18cd   : > { %s2362_s3 = smul.u32 30, %s3029_s5 }
0x18cf   : > { %2697 = vmatpush3.bf16.msra.mxu1 %v2971_v7  ;;  %s2025_s6 = scalar_lea.vmem %s3014_s30, %s2362_s3 }
0x18d0   : > { %2704 = vmatprep.subr.bf16.mxu1 %v2904_v0 }
0x199d   : > { %v1342_v54 = vpop.f32.mrb[8].mxu1 }
0x199e   : > { %v1346_v55 = vadd.f32 %v1342_v54, %v1273_v53  ;;  %v2559_v56 = vpop.f32.mrb[9].mxu1 }
0x19a0   : > { %2824 = vtanh.f32 %v1346_v55  ;;  %v2345_v58 = vmul.f32 -1.442695, %v1346_v55 }
0x19a2   : > { %2826 = vpow2.f32 %v2345_v58 }
0x19aa   : > { %v2825_v57 = vpop.eup %2824 }
0x19ab   : > { %1356 = vrot.lane.b32.xlu1 %v2825_v57, %s2907_s26 }
0x19ac   : > { %v2827_v59 = vpop.eup %2826 }
0x19ad   : > { %v1350_v60 = vadd.f32 1.0, %v2827_v59 }
0x19af   : > { %2828 = vrcp.f32 %v1350_v60 }
0x19b9   : > { %v2829_v61 = vpop.eup %2828 }
0x19ba   : > { %v1354_v2 = vmul.f32 %v2829_v61, %v1255_v48 }
0x1a1d   : > { %v1357_v62 = vpop.permute.xlu1 %1356 }
0x1a1e   : > { %v1359_v63 = vmul.f32 %v2829_v61, %v1357_v62 }
0x1a20   : > { %1361 = vrot.lane.b32.xlu0 %v1359_v63, %s2907_s26 }
0x1a92   : > { %v1362_v3 = vpop.permute.xlu0 %1361 }
0x1a93   : > { %v1364_v4 = vadd.f32 %v1362_v3, %v1354_v2 }
0x1a95   : > { %2830 = vtanh.f32 %v1364_v4 }
0x1a9f   : > { %v2831_v6 = vpop.eup %2830 }
0x1aa0   : > { %1367 = vrot.lane.b32.xlu1 %v2831_v6, %s2907_s26 }
0x1b12   : > { %v1368_v8 = vpop.permute.xlu1 %1367 }
0x1b13   : > { %v1370_v9 = vmul.f32 %v2829_v61, %v1368_v8 }
0x1b15   : > { %1372 = vrot.lane.b32.xlu0 %v1370_v9, %s2908_s27 }
0x1b87   : > { %v1373_v10 = vpop.permute.xlu0 %1372 }
0x1b88   : > { %1376 = vst.msk [vmem:[%s1375_s14] sm:$0x3] %vm269_vm0, %v1373_v10  ;;  %2569 = vmatmul.mubr.msk.f32.vlgmr.msra.gmra.mrb[10].mxu0 %vm286_vm2, %v1373_v10  ;;  %s2353_s14 = sshll.u32 %s3240_s8, 1 }
0x1b89   : > { %2700 = vmatpush3.bf16.msra.mxu0 %v2968_v5  ;;  %2590 = vmatprep.mubr.msk.f32.mxu0 %vm2905_vm1, %v2906_v1  ;;  %s1599_s16 = scalar_lea.vmem %s2999_s24, %s2353_s14  ;;  %s1702_s17 = scalar_lea.vmem %s3014_s30, %s2353_s14 }
0x1b8a   : > { %2701 = vmatprep.subr.bf16.mxu0 %v2904_v0  ;;  %v1600_v47 = vld [vmem:[%s1599_s16] sm:$0x3] }
0x1b8d   : > { %2703 = vmatpush3.bf16.msra.mxu0 %v2971_v7 }
0x1b8e   : > { %2710 = vmatprep.subr.bf16.mxu0 %v2904_v0 }
0x1c5b   : > { %v1451_v12 = vpop.f32.mrb[10].mxu0 }
0x1c5c   : > { %v1455_v13 = vadd.f32 %v1451_v12, %v1382_v11  ;;  %v2570_v14 = vpop.f32.mrb[11].mxu0 }
0x1c5e   : > { %2832 = vtanh.f32 %v1455_v13  ;;  %v2348_v16 = vmul.f32 -1.442695, %v1455_v13 }
0x1c60   : > { %2834 = vpow2.f32 %v2348_v16 }
0x1c68   : > { %v2833_v15 = vpop.eup %2832 }
0x1c69   : > { %1465 = vrot.lane.b32.xlu1 %v2833_v15, %s2907_s26 }
0x1c6a   : > { %v2835_v17 = vpop.eup %2834 }
0x1c6b   : > { %v1459_v18 = vadd.f32 1.0, %v2835_v17 }
0x1c6d   : > { %2836 = vrcp.f32 %v1459_v18 }
0x1c77   : > { %v2837_v19 = vpop.eup %2836 }
0x1c78   : > { %v1463_v22 = vmul.f32 %v2837_v19, %v1364_v4 }
0x1cdb   : > { %v1466_v20 = vpop.permute.xlu1 %1465 }
0x1cdc   : > { %v1468_v21 = vmul.f32 %v2837_v19, %v1466_v20 }
0x1cde   : > { %1470 = vrot.lane.b32.xlu0 %v1468_v21, %s2907_s26 }
0x1d50   : > { %v1471_v23 = vpop.permute.xlu0 %1470 }
0x1d51   : > { %v1473_v24 = vadd.f32 %v1471_v23, %v1463_v22 }
0x1d53   : > { %2838 = vtanh.f32 %v1473_v24 }
0x1d5d   : > { %v2839_v25 = vpop.eup %2838 }
0x1d5e   : > { %1476 = vrot.lane.b32.xlu1 %v2839_v25, %s2907_s26 }
0x1dd0   : > { %v1477_v26 = vpop.permute.xlu1 %1476 }
0x1dd1   : > { %v1479_v27 = vmul.f32 %v2837_v19, %v1477_v26  ;;  %v1816_v19 = vld [vmem:[%s1815_s29] sm:$0x3] }
0x1dd3   : > { %1481 = vrot.lane.b32.xlu0 %v1479_v27, %s2908_s27 }
0x1e45   : > { %v1482_v28 = vpop.permute.xlu0 %1481 }
0x1e46   : > { %1485 = vst.msk [vmem:[%s1484_s22] sm:$0x3] %vm269_vm0, %v1482_v28  ;;  %2580 = vmatmul.mubr.msk.f32.vlgmr.msra.gmra.mrb[10].mxu1 %vm286_vm2, %v1482_v28  ;;  %s1707_s22 = scalar_lea.vmem %s2999_s24, %s2356_s21 }
0x1e47   : > { %2706 = vmatpush3.bf16.msra.mxu1 %v2968_v5  ;;  %2601 = vmatprep.mubr.msk.f32.mxu1 %vm2905_vm1, %v2906_v1  ;;  %v1708_v3 = vld [vmem:[%s1707_s22] sm:$0x3] }
0x1e48   : > { %2707 = vmatprep.subr.bf16.mxu1 %v2904_v0 }
0x1e4b   : > { %2709 = vmatpush3.bf16.msra.mxu1 %v2971_v7 }
0x1e4c   : > { %2716 = vmatprep.subr.bf16.mxu1 %v2904_v0 }
0x1f19   : > { %v1560_v30 = vpop.f32.mrb[10].mxu1 }
0x1f1a   : > { %v1564_v31 = vadd.f32 %v1560_v30, %v1491_v29  ;;  %v2581_v32 = vpop.f32.mrb[11].mxu1 }
0x1f1c   : > { %2840 = vtanh.f32 %v1564_v31  ;;  %v2352_v34 = vmul.f32 -1.442695, %v1564_v31 }
0x1f1e   : > { %2842 = vpow2.f32 %v2352_v34 }
0x1f26   : > { %v2841_v33 = vpop.eup %2840 }
0x1f27   : > { %1574 = vrot.lane.b32.xlu1 %v2841_v33, %s2907_s26 }
0x1f28   : > { %v2843_v35 = vpop.eup %2842 }
0x1f29   : > { %v1568_v36 = vadd.f32 1.0, %v2843_v35 }
0x1f2b   : > { %2844 = vrcp.f32 %v1568_v36 }
0x1f35   : > { %v2845_v37 = vpop.eup %2844 }
0x1f36   : > { %v1572_v40 = vmul.f32 %v2845_v37, %v1473_v24 }
0x1f99   : > { %v1575_v38 = vpop.permute.xlu1 %1574 }
0x1f9a   : > { %v1577_v39 = vmul.f32 %v2845_v37, %v1575_v38 }
0x1f9c   : > { %1579 = vrot.lane.b32.xlu0 %v1577_v39, %s2907_s26 }
0x200e   : > { %v1580_v41 = vpop.permute.xlu0 %1579 }
0x200f   : > { %v1582_v42 = vadd.f32 %v1580_v41, %v1572_v40 }
0x2011   : > { %2846 = vtanh.f32 %v1582_v42 }
0x201b   : > { %v2847_v43 = vpop.eup %2846 }
0x201c   : > { %1585 = vrot.lane.b32.xlu1 %v2847_v43, %s2907_s26 }
0x208e   : > { %v1586_v44 = vpop.permute.xlu1 %1585 }
0x208f   : > { %v1588_v45 = vmul.f32 %v2845_v37, %v1586_v44 }
0x2091   : > { %1590 = vrot.lane.b32.xlu0 %v1588_v45, %s2908_s27 }
0x2103   : > { %v1591_v46 = vpop.permute.xlu0 %1590 }
0x2104   : > { %1594 = vst.msk [vmem:[%s1593_s4] sm:$0x3] %vm269_vm0, %v1591_v46  ;;  %2591 = vmatmul.mubr.msk.f32.vlgmr.msra.gmra.mrb[12].mxu0 %vm286_vm2, %v1591_v46  ;;  %s1922_s4 = scalar_lea.vmem %s2999_s24, %s2362_s3  ;;  %s2909_s24 = smov 96  }
0x2105   : > { %2712 = vmatpush3.bf16.msra.mxu0 %v2968_v5  ;;  %2612 = vmatprep.mubr.msk.f32.mxu0 %vm2905_vm1, %v2906_v1  ;;  %v1923_v37 = vld [vmem:[%s1922_s4] sm:$0x3] }
0x2106   : > { %2713 = vmatprep.subr.bf16.mxu0 %v2904_v0 }
0x2109   : > { %2715 = vmatpush3.bf16.msra.mxu0 %v2971_v7 }
0x21d7   : > { %v1669_v48 = vpop.f32.mrb[12].mxu0 }
0x21d8   : > { %v1673_v49 = vadd.f32 %v1669_v48, %v1600_v47  ;;  %v2592_v50 = vpop.f32.mrb[13].mxu0 }
0x21da   : > { %2848 = vtanh.f32 %v1673_v49  ;;  %v2355_v52 = vmul.f32 -1.442695, %v1673_v49 }
0x21dc   : > { %2850 = vpow2.f32 %v2355_v52 }
0x21e4   : > { %v2849_v51 = vpop.eup %2848 }
0x21e5   : > { %1683 = vrot.lane.b32.xlu1 %v2849_v51, %s2907_s26 }
0x21e6   : > { %v2851_v53 = vpop.eup %2850 }
0x21e7   : > { %v1677_v54 = vadd.f32 1.0, %v2851_v53 }
0x21e9   : > { %2852 = vrcp.f32 %v1677_v54 }
0x21f3   : > { %v2853_v55 = vpop.eup %2852 }
0x21f4   : > { %v1681_v58 = vmul.f32 %v2853_v55, %v1582_v42 }
0x2257   : > { %v1684_v56 = vpop.permute.xlu1 %1683 }
0x2258   : > { %v1686_v57 = vmul.f32 %v2853_v55, %v1684_v56 }
0x225a   : > { %1688 = vrot.lane.b32.xlu0 %v1686_v57, %s2907_s26 }
0x22cc   : > { %v1689_v59 = vpop.permute.xlu0 %1688 }
0x22cd   : > { %v1691_v60 = vadd.f32 %v1689_v59, %v1681_v58 }
0x22cf   : > { %2854 = vtanh.f32 %v1691_v60 }
0x22d9   : > { %v2855_v61 = vpop.eup %2854 }
0x22da   : > { %1694 = vrot.lane.b32.xlu1 %v2855_v61, %s2907_s26 }
0x234c   : > { %v1695_v62 = vpop.permute.xlu1 %1694 }
0x234d   : > { %v1697_v63 = vmul.f32 %v2853_v55, %v1695_v62 }
0x234f   : > { %1699 = vrot.lane.b32.xlu0 %v1697_v63, %s2908_s27 }
0x23c1   : > { %v1700_v2 = vpop.permute.xlu0 %1699 }
0x23c2   : > { %1703 = vst.msk [vmem:[%s1702_s17] sm:$0x3] %vm269_vm0, %v1700_v2  ;;  %2602 = vmatmul.mubr.msk.f32.vlgmr.msra.gmra.mrb[12].mxu1 %vm286_vm2, %v1700_v2 }
0x23c3   : > { %2718 = vmatpush3.bf16.msra.mxu1 %v2968_v5  ;;  %2623 = vmatprep.mubr.msk.f32.mxu1 %vm2905_vm1, %v2906_v1 }
0x23c4   : > { %2719 = vmatprep.subr.bf16.mxu1 %v2904_v0 }
0x23c7   : > { %2721 = vmatpush3.bf16.msra.mxu1 %v2971_v7 }
0x2495   : > { %v1777_v4 = vpop.f32.mrb[12].mxu1 }
0x2496   : > { %v1781_v6 = vadd.f32 %v1777_v4, %v1708_v3  ;;  %v2603_v8 = vpop.f32.mrb[13].mxu1 }
0x2498   : > { %2856 = vtanh.f32 %v1781_v6  ;;  %v2358_v5 = vmul.f32 -1.442695, %v1781_v6 }
0x249a   : > { %2858 = vpow2.f32 %v2358_v5 }
0x24a2   : > { %v2857_v9 = vpop.eup %2856 }
0x24a3   : > { %1791 = vrot.lane.b32.xlu1 %v2857_v9, %s2907_s26 }
0x24a4   : > { %v2859_v1 = vpop.eup %2858 }
0x24a5   : > { %v1785_v0 = vadd.f32 1.0, %v2859_v1 }
0x24a7   : > { %2860 = vrcp.f32 %v1785_v0 }
0x24b1   : > { %v2861_v7 = vpop.eup %2860 }
0x24b2   : > { %v1789_v12 = vmul.f32 %v2861_v7, %v1691_v60 }
0x2515   : > { %v1792_v10 = vpop.permute.xlu1 %1791 }
0x2516   : > { %v1794_v11 = vmul.f32 %v2861_v7, %v1792_v10 }
0x2518   : > { %1796 = vrot.lane.b32.xlu0 %v1794_v11, %s2907_s26 }
0x258a   : > { %v1797_v13 = vpop.permute.xlu0 %1796 }
0x258b   : > { %v1799_v14 = vadd.f32 %v1797_v13, %v1789_v12 }
0x258d   : > { %2862 = vtanh.f32 %v1799_v14 }
0x2597   : > { %v2863_v15 = vpop.eup %2862 }
0x2598   : > { %1802 = vrot.lane.b32.xlu1 %v2863_v15, %s2907_s26 }
0x260a   : > { %v1803_v16 = vpop.permute.xlu1 %1802 }
0x260b   : > { %v1805_v17 = vmul.f32 %v2861_v7, %v1803_v16 }
0x260d   : > { %1807 = vrot.lane.b32.xlu0 %v1805_v17, %s2908_s27 }
0x267f   : > { %v1808_v18 = vpop.permute.xlu0 %1807 }
0x2680   : > { %1811 = vst.msk [vmem:[%s1810_s13] sm:$0x3] %vm269_vm0, %v1808_v18  ;;  %2613 = vmatmul.mubr.msk.f32.vlgmr.msra.gmra.mrb[14].mxu0 %vm286_vm2, %v1808_v18 }
0x2753   : > { %v1885_v20 = vpop.f32.mrb[14].mxu0 }
0x2754   : > { %v1889_v21 = vadd.f32 %v1885_v20, %v1816_v19  ;;  %v2614_v22 = vpop.f32.mrb[15].mxu0 }
0x2756   : > { %2864 = vtanh.f32 %v1889_v21  ;;  %v2361_v24 = vmul.f32 -1.442695, %v1889_v21 }
0x2758   : > { %2866 = vpow2.f32 %v2361_v24 }
0x2760   : > { %v2865_v23 = vpop.eup %2864 }
0x2761   : > { %1899 = vrot.lane.b32.xlu1 %v2865_v23, %s2907_s26 }
0x2762   : > { %v2867_v25 = vpop.eup %2866 }
0x2763   : > { %v1893_v26 = vadd.f32 1.0, %v2867_v25 }
0x2765   : > { %2868 = vrcp.f32 %v1893_v26 }
0x276f   : > { %v2869_v27 = vpop.eup %2868 }
0x2770   : > { %v1897_v30 = vmul.f32 %v2869_v27, %v1799_v14 }
0x27d3   : > { %v1900_v28 = vpop.permute.xlu1 %1899 }
0x27d4   : > { %v1902_v29 = vmul.f32 %v2869_v27, %v1900_v28 }
0x27d6   : > { %1904 = vrot.lane.b32.xlu0 %v1902_v29, %s2907_s26 }
0x2848   : > { %v1905_v31 = vpop.permute.xlu0 %1904 }
0x2849   : > { %v1907_v32 = vadd.f32 %v1905_v31, %v1897_v30 }
0x284b   : > { %2870 = vtanh.f32 %v1907_v32 }
0x2855   : > { %v2871_v33 = vpop.eup %2870 }
0x2856   : > { %1910 = vrot.lane.b32.xlu1 %v2871_v33, %s2907_s26 }
0x28c8   : > { %v1911_v34 = vpop.permute.xlu1 %1910 }
0x28c9   : > { %v1913_v35 = vmul.f32 %v2869_v27, %v1911_v34 }
0x28cb   : > { %1915 = vrot.lane.b32.xlu0 %v1913_v35, %s2908_s27 }
0x293d   : > { %v1916_v36 = vpop.permute.xlu0 %1915 }
0x293e   : > { %1919 = vst.msk [vmem:[%s1918_s9] sm:$0x3] %vm269_vm0, %v1916_v36  ;;  %2624 = vmatmul.mubr.msk.f32.vlgmr.msra.gmra.mrb[14].mxu1 %vm286_vm2, %v1916_v36 }
0x2a11   : > { %v1992_v38 = vpop.f32.mrb[14].mxu1 }
0x2a12   : > { %v1996_v39 = vadd.f32 %v1992_v38, %v1923_v37  ;;  %v2625_v40 = vpop.f32.mrb[15].mxu1 }
0x2a14   : > { %2872 = vtanh.f32 %v1996_v39  ;;  %v2364_v42 = vmul.f32 -1.442695, %v1996_v39 }
0x2a16   : > { %2874 = vpow2.f32 %v2364_v42 }
0x2a1e   : > { %v2873_v41 = vpop.eup %2872 }
0x2a1f   : > { %2006 = vrot.lane.b32.xlu1 %v2873_v41, %s2907_s26 }
0x2a20   : > { %v2875_v43 = vpop.eup %2874 }
0x2a21   : > { %v2000_v44 = vadd.f32 1.0, %v2875_v43 }
0x2a23   : > { %2876 = vrcp.f32 %v2000_v44 }
0x2a2d   : > { %v2877_v45 = vpop.eup %2876 }
0x2a2e   : > { %v2004_v48 = vmul.f32 %v2877_v45, %v1907_v32 }
0x2a91   : > { %v2007_v46 = vpop.permute.xlu1 %2006 }
0x2a92   : > { %v2009_v47 = vmul.f32 %v2877_v45, %v2007_v46 }
0x2a94   : > { %2011 = vrot.lane.b32.xlu0 %v2009_v47, %s2907_s26 }
0x2b06   : > { %v2012_v49 = vpop.permute.xlu0 %2011 }
0x2b07   : > { %v2014_v50 = vadd.f32 %v2012_v49, %v2004_v48 }
0x2b09   : > { %2878 = vtanh.f32 %v2014_v50 }
0x2b13   : > { %v2879_v51 = vpop.eup %2878 }
0x2b14   : > { %2017 = vrot.lane.b32.xlu1 %v2879_v51, %s2907_s26 }
0x2b18   : > { %2029 = vrot.lane.b32.xlu1 %v2014_v50, %s2909_s24 }
0x2b86   : > { %v2018_v52 = vpop.permute.xlu1 %2017 }
0x2b87   : > { %v2020_v53 = vmul.f32 %v2877_v45, %v2018_v52 }
0x2b89   : > { %2022 = vrot.lane.b32.xlu0 %v2020_v53, %s2908_s27 }
0x2b8a   : > { %v2030_v54 = vpop.permute.xlu1 %2029 }
0x2b8b   : > { %2032 = vst.msk [vmem:[%s2989_s20] sm:$0x3] %vm269_vm0, %v2030_v54 }
0x2bfb   : > { %v2023_v55 = vpop.permute.xlu0 %2022 }
0x2bfc   : > { %2026 = vst.msk [vmem:[%s2025_s6] sm:$0x3] %vm269_vm0, %v2023_v55  ;;  %2027 = vst.msk [vmem:[%s2954_s15] sm:$0x3] %vm269_vm0, %v2023_v55 }
0x2bfd PF: > { %s12_s11 = sadd.s32 1, %s2902_s11   ;;  %s3310_s9 = smov %s2898_s10 }
0x2bfe   : > { %p9_p5 = scmp.ge.s32.totalorder %s12_s11, 4   ;;  %s3311_s10 = smov %s3313_s12 }
0x2c00   :  { %11 = sbr.rel (!%p9_p5) target bundleno = 2 (0x2), region = 101 }

</bundles_post_ra>
